<compile_context>
chip_gen: v7x
topology: tpu7x:2x2x1
jax: 0.10.0
libtpu: 0.0.40
codegen_flags: <defaults>
</compile_context>

<pallas_src>
import functools

import jax
import jax.numpy as jnp
from jax.experimental import pallas as pl
from jax.experimental.pallas import tpu as pltpu

EPS = 1e-5        # torch.nn.LayerNorm default
H1_TRUE = 200     # true width of the LayerNorm'd hidden layers
H2_TRUE = 800
LANE = 128


def _round_up(x, m):
    return (x + m - 1) // m * m


def _cdiv(a, b):
    return (a + b - 1) // b


def _layernorm(h, gamma, beta, n_valid):
    """LayerNorm over the last axis, where lanes >= n_valid are exactly zero.

    One-pass E[x^2] - E[x]^2 with an explicit 1/n_valid so the zero-padded lanes do
    not change the statistics.  This is numerically safe here ONLY because h is a
    tanh output bounded in [-1, 1]; revisit if the activation ever changes.
    gamma/beta are zero in the padded lanes, so the output stays zero there as well.
    """
    inv_n = 1.0 / n_valid
    mean = jnp.sum(h, axis=-1, keepdims=True) * inv_n
    ex2 = jnp.sum(h * h, axis=-1, keepdims=True) * inv_n
    var = jnp.maximum(ex2 - mean * mean, 0.0)
    inv_std = jax.lax.rsqrt(var + EPS)
    return (h - mean) * (inv_std * gamma) + beta


def net_kernel(x_ref,
               w1_ref, b1_ref,
               w2_ref, b2_ref,
               w3_ref, b3_ref,
               w4_ref, b4_ref,
               g_ref, beta_ref,
               o_ref, *, bf16_elementwise):
    gamma = g_ref[...]          # (1, 256) f32, zero in padded lanes
    beta = beta_ref[...]        # (1, 256) f32, zero in padded lanes

    # In-kernel bf16 cast of the (tile, input_size) block -- no wrapper pad/cast pass.
    x = x_ref[...].astype(jnp.bfloat16)

    # linear1 (unpadded K = input_size, bf16 MXU, f32 acc) -> tanh -> LayerNorm(200)
    h = jnp.dot(x, w1_ref[...], preferred_element_type=jnp.float32) + b1_ref[...]
    h = _layernorm(jnp.tanh(h), gamma, beta, H1_TRUE)

    # linear2 -> tanh (bf16 elementwise on v6e/v7x, f32 on v5e and older)
    h = jnp.dot(h.astype(jnp.bfloat16), w2_ref[...],
                preferred_element_type=jnp.float32) + b2_ref[...]
    if bf16_elementwise:
        h = jnp.tanh(h.astype(jnp.bfloat16))
    else:
        h = jnp.tanh(h).astype(jnp.bfloat16)

    # linear3 -> tanh -> LayerNorm (same shared norm parameters)
    h = jnp.dot(h, w3_ref[...], preferred_element_type=jnp.float32) + b3_ref[...]
    h = _layernorm(jnp.tanh(h), gamma, beta, H1_TRUE)

    # linear4 (unpadded N = output_size) -> sigmoid, exact-width store
    h = jnp.dot(h.astype(jnp.bfloat16), w4_ref[...],
                preferred_element_type=jnp.float32) + b4_ref[...]
    o_ref[...] = jax.nn.sigmoid(h).astype(o_ref.dtype)


def init_params(key, input_size, output_size):
    """Deterministic init mimicking PyTorch Linear defaults (uniform +-1/sqrt(fan_in)).

    Weights are stored pre-transposed as (in_features, out_features), f32.
    Biases / norm params stored as (1, features).
    """
    dims = [(input_size, H1_TRUE), (H1_TRUE, H2_TRUE),
            (H2_TRUE, H1_TRUE), (H1_TRUE, output_size)]
    params = {}
    for idx, (fan_in, fan_out) in enumerate(dims, start=1):
        key, kw, kb = jax.random.split(key, 3)
        bound = 1.0 / (fan_in ** 0.5)
        params[f"w{idx}"] = jax.random.uniform(
            kw, (fan_in, fan_out), jnp.float32, -bound, bound)
        params[f"b{idx}"] = jax.random.uniform(
            kb, (1, fan_out), jnp.float32, -bound, bound)
    params["gamma"] = jnp.ones((1, H1_TRUE), jnp.float32)
    params["beta"] = jnp.zeros((1, H1_TRUE), jnp.float32)
    return params


def prepare_params(params):
    """Zero-pad the hidden dims to lane multiples (200->256, 800->896) and cast
    weights to bf16.  Input (K of linear1) and output (N of linear4) dims stay
    unpadded; the kernel handles them directly."""
    input_size = params["w1"].shape[0]
    output_size = params["w4"].shape[1]
    h1_p = _round_up(H1_TRUE, LANE)      # 200 -> 256
    h2_p = _round_up(H2_TRUE, LANE)      # 800 -> 896

    def pad_w(w, rows, cols):
        r, c = w.shape
        return jnp.pad(w, ((0, rows - r), (0, cols - c))).astype(jnp.bfloat16)

    def pad_b(b, cols):
        b = b.reshape(1, -1)
        return jnp.pad(b, ((0, 0), (0, cols - b.shape[1]))).astype(jnp.float32)

    return {
        "w1": pad_w(params["w1"], input_size, h1_p), "b1": pad_b(params["b1"], h1_p),
        "w2": pad_w(params["w2"], h1_p, h2_p),       "b2": pad_b(params["b2"], h2_p),
        "w3": pad_w(params["w3"], h2_p, h1_p),       "b3": pad_b(params["b3"], h1_p),
        "w4": pad_w(params["w4"], h1_p, output_size),
        "b4": pad_b(params["b4"], output_size),
        "gamma": pad_b(params["gamma"], h1_p),       "beta": pad_b(params["beta"], h1_p),
    }


@functools.partial(jax.jit, static_argnames=("batch_tile",))
def net_forward(x, prepared, batch_tile=512):
    """x: (B, input_size) f32.  prepared: output of prepare_params().
    Returns (B, output_size) f32."""
    B, in_dim = x.shape
    h1_p = prepared["w1"].shape[1]
    h2_p = prepared["w2"].shape[1]
    out_dim = prepared["w4"].shape[1]

    # Tile choice: large tiles amortize the ~0.35us per-grid-step overhead; at least
    # 2 steps (when B allows) so v7x's two TensorCores both get work and DMA overlaps
    # compute; 16-row granularity matches bf16 sublane packing; padding rows are
    # spread across steps instead of an almost-empty last tile.
    n_steps = max(min(2, _cdiv(B, 16)), _cdiv(B, batch_tile))
    tile = _round_up(_cdiv(B, n_steps), 16)
    b_pad = n_steps * tile

    if b_pad != B:
        x = jnp.pad(x, ((0, b_pad - B), (0, 0)))

    # v5e and older have no bf16 VPU/EUP; keep the layer-2 tanh in f32 there.
    kind = jax.devices()[0].device_kind.lower()
    bf16_ew = not any(v in kind for v in ("v2", "v3", "v4", "v5"))

    def const_spec(shape):
        n = len(shape)
        return pl.BlockSpec(shape, lambda i, _n=n: (0,) * _n)

    in_specs = [
        pl.BlockSpec((tile, in_dim), lambda i: (i, 0)),     # batch-tiled input, unpadded K
        const_spec(prepared["w1"].shape), const_spec(prepared["b1"].shape),
        const_spec(prepared["w2"].shape), const_spec(prepared["b2"].shape),
        const_spec(prepared["w3"].shape), const_spec(prepared["b3"].shape),
        const_spec(prepared["w4"].shape), const_spec(prepared["b4"].shape),
        const_spec(prepared["gamma"].shape), const_spec(prepared["beta"].shape),
    ]

    flops = 2 * b_pad * (in_dim * h1_p + h1_p * h2_p + h2_p * h1_p + h1_p * out_dim)
    transcendentals = b_pad * (2 * h1_p + h2_p + out_dim + 4)
    bytes_accessed = (b_pad * in_dim * 4 + b_pad * out_dim * 4
                      + sum(int(v.size) * v.dtype.itemsize for v in prepared.values()))

    out = pl.pallas_call(
        functools.partial(net_kernel, bf16_elementwise=bf16_ew),
        out_shape=jax.ShapeDtypeStruct((b_pad, out_dim), jnp.float32),
        grid_spec=pltpu.PrefetchScalarGridSpec(
            num_scalar_prefetch=0,
            grid=(n_steps,),
            in_specs=in_specs,
            out_specs=pl.BlockSpec((tile, out_dim), lambda i: (i, 0)),
        ),
        compiler_params=pltpu.CompilerParams(
            dimension_semantics=("parallel",)),
        cost_estimate=pl.CostEstimate(
            flops=flops, transcendentals=transcendentals,
            bytes_accessed=bytes_accessed),
    )(x,
      prepared["w1"], prepared["b1"],
      prepared["w2"], prepared["b2"],
      prepared["w3"], prepared["b3"],
      prepared["w4"], prepared["b4"],
      prepared["gamma"], prepared["beta"])

    return out if b_pad == B else out[:B]


def reference_forward(x, params):
    """Pure-JAX f32 reference matching the PyTorch module."""
    def ln(y):
        m = jnp.mean(y, axis=-1, keepdims=True)
        v = jnp.mean((y - m) ** 2, axis=-1, keepdims=True)
        return (y - m) / jnp.sqrt(v + EPS) * params["gamma"] + params["beta"]

    y = ln(jnp.tanh(x @ params["w1"] + params["b1"]))
    y = jnp.tanh(y @ params["w2"] + params["b2"])
    y = ln(jnp.tanh(y @ params["w3"] + params["b3"]))
    return jax.nn.sigmoid(y @ params["w4"] + params["b4"])


if __name__ == "__main__":
    key = jax.random.PRNGKey(0)
    input_size, output_size = 32, 16

    kp, kx1, kx2 = jax.random.split(key, 3)
    params = init_params(kp, input_size, output_size)
    prepared = prepare_params(params)

    # Small-shape check (batch=8 -> padded to one 16-row tile, single grid step).
    x_small = jax.random.normal(kx1, (8, input_size), jnp.float32)
    out_small = jax.block_until_ready(net_forward(x_small, prepared))
    ref_small = reference_forward(x_small, params)
    assert out_small.shape == (8, output_size)
    # Accuracy contract: bf16 matmul operands (f32 accumulation) => ~bf16-level error vs f32 ref.
    assert jnp.allclose(out_small, ref_small, atol=2e-2), "small-batch mismatch vs reference"

    # Larger batch exercising the production path (two 256-row tiles, parallel axis).
    x_big = jax.random.normal(kx2, (512, input_size), jnp.float32)
    out_big = jax.block_until_ready(net_forward(x_big, prepared))
    ref_big = reference_forward(x_big, params)
    assert out_big.shape == (512, output_size)
    assert jnp.allclose(out_big, ref_big, atol=2e-2), "large-batch mismatch vs reference"

    print("KERNEL_OK")
</pallas_src>

<mosaic_0001>
module attributes {stable_mosaic.version = 11 : i64} {
  func.func @net_kernel(%arg0: i32, %arg1: memref<16x32xf32, #tpu.memory_space<vmem>>, %arg2: memref<32x256xbf16, #tpu.memory_space<vmem>>, %arg3: memref<1x256xf32, #tpu.memory_space<vmem>>, %arg4: memref<256x896xbf16, #tpu.memory_space<vmem>>, %arg5: memref<1x896xf32, #tpu.memory_space<vmem>>, %arg6: memref<896x256xbf16, #tpu.memory_space<vmem>>, %arg7: memref<1x256xf32, #tpu.memory_space<vmem>>, %arg8: memref<256x16xbf16, #tpu.memory_space<vmem>>, %arg9: memref<1x16xf32, #tpu.memory_space<vmem>>, %arg10: memref<1x256xf32, #tpu.memory_space<vmem>>, %arg11: memref<1x256xf32, #tpu.memory_space<vmem>>, %arg12: memref<16x16xf32, #tpu.memory_space<vmem>>) attributes {dimension_semantics = [#tpu.dimension_semantics<parallel>], iteration_bounds = array<i64: 1>, scalar_prefetch = 0 : i64, scratch_operands = 0 : i64, tpu.core_type = #tpu.core_type<tc>, window_params = [{transform_indices = @transform_0, window_bounds = array<i64: 16, 32>}, {pipeline_mode = #tpu.pipeline_mode<synchronous>, transform_indices = @transform_1, window_bounds = array<i64: 32, 256>}, {pipeline_mode = #tpu.pipeline_mode<synchronous>, transform_indices = @transform_2, window_bounds = array<i64: 1, 256>}, {pipeline_mode = #tpu.pipeline_mode<synchronous>, transform_indices = @transform_3, window_bounds = array<i64: 256, 896>}, {pipeline_mode = #tpu.pipeline_mode<synchronous>, transform_indices = @transform_4, window_bounds = array<i64: 1, 896>}, {pipeline_mode = #tpu.pipeline_mode<synchronous>, transform_indices = @transform_5, window_bounds = array<i64: 896, 256>}, {pipeline_mode = #tpu.pipeline_mode<synchronous>, transform_indices = @transform_6, window_bounds = array<i64: 1, 256>}, {pipeline_mode = #tpu.pipeline_mode<synchronous>, transform_indices = @transform_7, window_bounds = array<i64: 256, 16>}, {pipeline_mode = #tpu.pipeline_mode<synchronous>, transform_indices = @transform_8, window_bounds = array<i64: 1, 16>}, {pipeline_mode = #tpu.pipeline_mode<synchronous>, transform_indices = @transform_9, window_bounds = array<i64: 1, 256>}, {pipeline_mode = #tpu.pipeline_mode<synchronous>, transform_indices = @transform_10, window_bounds = array<i64: 1, 256>}, {transform_indices = @transform_11, window_bounds = array<i64: 16, 16>}]} {
    %c0 = arith.constant 0 : index
    %c0_0 = arith.constant 0 : index
    %0 = vector.load %arg10[%c0, %c0_0] : memref<1x256xf32, #tpu.memory_space<vmem>>, vector<1x256xf32>
    %c0_1 = arith.constant 0 : index
    %c0_2 = arith.constant 0 : index
    %1 = vector.load %arg11[%c0_1, %c0_2] : memref<1x256xf32, #tpu.memory_space<vmem>>, vector<1x256xf32>
    %c0_3 = arith.constant 0 : index
    %c0_4 = arith.constant 0 : index
    %2 = vector.load %arg1[%c0_3, %c0_4] : memref<16x32xf32, #tpu.memory_space<vmem>>, vector<16x32xf32>
    %3 = arith.truncf %2 : vector<16x32xf32> to vector<16x32xbf16>
    %c0_5 = arith.constant 0 : index
    %c0_6 = arith.constant 0 : index
    %4 = vector.load %arg2[%c0_5, %c0_6] : memref<32x256xbf16, #tpu.memory_space<vmem>>, vector<32x256xbf16>
    %cst = arith.constant dense<0.000000e+00> : vector<16x256xf32>
    %5 = tpu.matmul %3, %4, %cst {dimension_numbers = #tpu.dot_dimension_numbers<[1], [0], [0], [1], [0, 0, 1, 1], [], []>} : vector<16x32xbf16>, vector<32x256xbf16>, vector<16x256xf32> -> vector<16x256xf32>
    %c0_7 = arith.constant 0 : index
    %c0_8 = arith.constant 0 : index
    %6 = vector.load %arg3[%c0_7, %c0_8] : memref<1x256xf32, #tpu.memory_space<vmem>>, vector<1x256xf32>
    %7 = vector.broadcast %6 : vector<1x256xf32> to vector<16x256xf32>
    %8 = arith.addf %5, %7 : vector<16x256xf32>
    %9 = math.tanh %8 : vector<16x256xf32>
    %cst_9 = arith.constant dense<0.000000e+00> : vector<16xf32>
    %10 = vector.multi_reduction <add>, %9, %cst_9 [1] : vector<16x256xf32> to vector<16xf32>
    %11 = vector.shape_cast %10 : vector<16xf32> to vector<16x1xf32>
    %cst_10 = arith.constant 5.000000e-03 : f32
    %12 = vector.broadcast %cst_10 : f32 to vector<16x1xf32>
    %13 = arith.mulf %11, %12 : vector<16x1xf32>
    %14 = arith.mulf %9, %9 : vector<16x256xf32>
    %cst_11 = arith.constant dense<0.000000e+00> : vector<16xf32>
    %15 = vector.multi_reduction <add>, %14, %cst_11 [1] : vector<16x256xf32> to vector<16xf32>
    %16 = vector.shape_cast %15 : vector<16xf32> to vector<16x1xf32>
    %cst_12 = arith.constant 5.000000e-03 : f32
    %17 = vector.broadcast %cst_12 : f32 to vector<16x1xf32>
    %18 = arith.mulf %16, %17 : vector<16x1xf32>
    %19 = arith.mulf %13, %13 : vector<16x1xf32>
    %20 = arith.subf %18, %19 : vector<16x1xf32>
    %cst_13 = arith.constant 0.000000e+00 : f32
    %21 = vector.broadcast %cst_13 : f32 to vector<16x1xf32>
    %22 = arith.maximumf %20, %21 : vector<16x1xf32>
    %cst_14 = arith.constant 9.99999974E-6 : f32
    %23 = vector.broadcast %cst_14 : f32 to vector<16x1xf32>
    %24 = arith.addf %22, %23 : vector<16x1xf32>
    %25 = math.rsqrt %24 : vector<16x1xf32>
    %26 = vector.broadcast %13 : vector<16x1xf32> to vector<16x256xf32>
    %27 = arith.subf %9, %26 : vector<16x256xf32>
    %28 = vector.broadcast %25 : vector<16x1xf32> to vector<16x256xf32>
    %29 = vector.broadcast %0 : vector<1x256xf32> to vector<16x256xf32>
    %30 = arith.mulf %28, %29 : vector<16x256xf32>
    %31 = arith.mulf %27, %30 : vector<16x256xf32>
    %32 = vector.broadcast %1 : vector<1x256xf32> to vector<16x256xf32>
    %33 = arith.addf %31, %32 : vector<16x256xf32>
    %34 = arith.truncf %33 : vector<16x256xf32> to vector<16x256xbf16>
    %c0_15 = arith.constant 0 : index
    %c0_16 = arith.constant 0 : index
    %35 = vector.load %arg4[%c0_15, %c0_16] : memref<256x896xbf16, #tpu.memory_space<vmem>>, vector<256x896xbf16>
    %cst_17 = arith.constant dense<0.000000e+00> : vector<16x896xf32>
    %36 = tpu.matmul %34, %35, %cst_17 {dimension_numbers = #tpu.dot_dimension_numbers<[1], [0], [0], [1], [0, 0, 1, 1], [], []>} : vector<16x256xbf16>, vector<256x896xbf16>, vector<16x896xf32> -> vector<16x896xf32>
    %c0_18 = arith.constant 0 : index
    %c0_19 = arith.constant 0 : index
    %37 = vector.load %arg5[%c0_18, %c0_19] : memref<1x896xf32, #tpu.memory_space<vmem>>, vector<1x896xf32>
    %38 = vector.broadcast %37 : vector<1x896xf32> to vector<16x896xf32>
    %39 = arith.addf %36, %38 : vector<16x896xf32>
    %40 = arith.truncf %39 : vector<16x896xf32> to vector<16x896xbf16>
    %41 = math.tanh %40 : vector<16x896xbf16>
    %c0_20 = arith.constant 0 : index
    %c0_21 = arith.constant 0 : index
    %42 = vector.load %arg6[%c0_20, %c0_21] : memref<896x256xbf16, #tpu.memory_space<vmem>>, vector<896x256xbf16>
    %cst_22 = arith.constant dense<0.000000e+00> : vector<16x256xf32>
    %43 = tpu.matmul %41, %42, %cst_22 {dimension_numbers = #tpu.dot_dimension_numbers<[1], [0], [0], [1], [0, 0, 1, 1], [], []>} : vector<16x896xbf16>, vector<896x256xbf16>, vector<16x256xf32> -> vector<16x256xf32>
    %c0_23 = arith.constant 0 : index
    %c0_24 = arith.constant 0 : index
    %44 = vector.load %arg7[%c0_23, %c0_24] : memref<1x256xf32, #tpu.memory_space<vmem>>, vector<1x256xf32>
    %45 = vector.broadcast %44 : vector<1x256xf32> to vector<16x256xf32>
    %46 = arith.addf %43, %45 : vector<16x256xf32>
    %47 = math.tanh %46 : vector<16x256xf32>
    %cst_25 = arith.constant dense<0.000000e+00> : vector<16xf32>
    %48 = vector.multi_reduction <add>, %47, %cst_25 [1] : vector<16x256xf32> to vector<16xf32>
    %49 = vector.shape_cast %48 : vector<16xf32> to vector<16x1xf32>
    %cst_26 = arith.constant 5.000000e-03 : f32
    %50 = vector.broadcast %cst_26 : f32 to vector<16x1xf32>
    %51 = arith.mulf %49, %50 : vector<16x1xf32>
    %52 = arith.mulf %47, %47 : vector<16x256xf32>
    %cst_27 = arith.constant dense<0.000000e+00> : vector<16xf32>
    %53 = vector.multi_reduction <add>, %52, %cst_27 [1] : vector<16x256xf32> to vector<16xf32>
    %54 = vector.shape_cast %53 : vector<16xf32> to vector<16x1xf32>
    %cst_28 = arith.constant 5.000000e-03 : f32
    %55 = vector.broadcast %cst_28 : f32 to vector<16x1xf32>
    %56 = arith.mulf %54, %55 : vector<16x1xf32>
    %57 = arith.mulf %51, %51 : vector<16x1xf32>
    %58 = arith.subf %56, %57 : vector<16x1xf32>
    %cst_29 = arith.constant 0.000000e+00 : f32
    %59 = vector.broadcast %cst_29 : f32 to vector<16x1xf32>
    %60 = arith.maximumf %58, %59 : vector<16x1xf32>
    %cst_30 = arith.constant 9.99999974E-6 : f32
    %61 = vector.broadcast %cst_30 : f32 to vector<16x1xf32>
    %62 = arith.addf %60, %61 : vector<16x1xf32>
    %63 = math.rsqrt %62 : vector<16x1xf32>
    %64 = vector.broadcast %51 : vector<16x1xf32> to vector<16x256xf32>
    %65 = arith.subf %47, %64 : vector<16x256xf32>
    %66 = vector.broadcast %63 : vector<16x1xf32> to vector<16x256xf32>
    %67 = vector.broadcast %0 : vector<1x256xf32> to vector<16x256xf32>
    %68 = arith.mulf %66, %67 : vector<16x256xf32>
    %69 = arith.mulf %65, %68 : vector<16x256xf32>
    %70 = vector.broadcast %1 : vector<1x256xf32> to vector<16x256xf32>
    %71 = arith.addf %69, %70 : vector<16x256xf32>
    %72 = arith.truncf %71 : vector<16x256xf32> to vector<16x256xbf16>
    %c0_31 = arith.constant 0 : index
    %c0_32 = arith.constant 0 : index
    %73 = vector.load %arg8[%c0_31, %c0_32] : memref<256x16xbf16, #tpu.memory_space<vmem>>, vector<256x16xbf16>
    %cst_33 = arith.constant dense<0.000000e+00> : vector<16x16xf32>
    %74 = tpu.matmul %72, %73, %cst_33 {dimension_numbers = #tpu.dot_dimension_numbers<[1], [0], [0], [1], [0, 0, 1, 1], [], []>} : vector<16x256xbf16>, vector<256x16xbf16>, vector<16x16xf32> -> vector<16x16xf32>
    %c0_34 = arith.constant 0 : index
    %c0_35 = arith.constant 0 : index
    %75 = vector.load %arg9[%c0_34, %c0_35] : memref<1x16xf32, #tpu.memory_space<vmem>>, vector<1x16xf32>
    %76 = vector.broadcast %75 : vector<1x16xf32> to vector<16x16xf32>
    %77 = arith.addf %74, %76 : vector<16x16xf32>
    %78 = arith.negf %77 : vector<16x16xf32>
    %79 = math.exp %78 : vector<16x16xf32>
    %cst_36 = arith.constant 1.000000e+00 : f32
    %80 = vector.broadcast %cst_36 : f32 to vector<16x16xf32>
    %81 = arith.addf %80, %79 : vector<16x16xf32>
    %82 = arith.divf %80, %81 : vector<16x16xf32>
    %c0_37 = arith.constant 0 : index
    %c0_38 = arith.constant 0 : index
    %83 = vector.load %arg12[%c0_37, %c0_38] : memref<16x16xf32, #tpu.memory_space<vmem>>, vector<16x16xf32>
    tpu.vector_store %arg12[%c0_37, %c0_38], %82 {strides = array<i32>} : memref<16x16xf32, #tpu.memory_space<vmem>>, vector<16x16xf32>,
    return
  }
  func.func @transform_0(%arg0: i32) -> (i32, i32) {
    %c0_i32 = arith.constant 0 : i32
    %c0_i32_0 = arith.constant 0 : i32
    return %arg0, %c0_i32 : i32, i32
  }
  func.func @transform_1(%arg0: i32) -> (i32, i32) {
    %c0_i32 = arith.constant 0 : i32
    %c0_i32_0 = arith.constant 0 : i32
    %c0_i32_1 = arith.constant 0 : i32
    return %c0_i32, %c0_i32_0 : i32, i32
  }
  func.func @transform_2(%arg0: i32) -> (i32, i32) {
    %c0_i32 = arith.constant 0 : i32
    %c0_i32_0 = arith.constant 0 : i32
    %c0_i32_1 = arith.constant 0 : i32
    return %c0_i32, %c0_i32_0 : i32, i32
  }
  func.func @transform_3(%arg0: i32) -> (i32, i32) {
    %c0_i32 = arith.constant 0 : i32
    %c0_i32_0 = arith.constant 0 : i32
    %c0_i32_1 = arith.constant 0 : i32
    return %c0_i32, %c0_i32_0 : i32, i32
  }
  func.func @transform_4(%arg0: i32) -> (i32, i32) {
    %c0_i32 = arith.constant 0 : i32
    %c0_i32_0 = arith.constant 0 : i32
    %c0_i32_1 = arith.constant 0 : i32
    return %c0_i32, %c0_i32_0 : i32, i32
  }
  func.func @transform_5(%arg0: i32) -> (i32, i32) {
    %c0_i32 = arith.constant 0 : i32
    %c0_i32_0 = arith.constant 0 : i32
    %c0_i32_1 = arith.constant 0 : i32
    return %c0_i32, %c0_i32_0 : i32, i32
  }
  func.func @transform_6(%arg0: i32) -> (i32, i32) {
    %c0_i32 = arith.constant 0 : i32
    %c0_i32_0 = arith.constant 0 : i32
    %c0_i32_1 = arith.constant 0 : i32
    return %c0_i32, %c0_i32_0 : i32, i32
  }
  func.func @transform_7(%arg0: i32) -> (i32, i32) {
    %c0_i32 = arith.constant 0 : i32
    %c0_i32_0 = arith.constant 0 : i32
    %c0_i32_1 = arith.constant 0 : i32
    return %c0_i32, %c0_i32_0 : i32, i32
  }
  func.func @transform_8(%arg0: i32) -> (i32, i32) {
    %c0_i32 = arith.constant 0 : i32
    %c0_i32_0 = arith.constant 0 : i32
    %c0_i32_1 = arith.constant 0 : i32
    return %c0_i32, %c0_i32_0 : i32, i32
  }
  func.func @transform_9(%arg0: i32) -> (i32, i32) {
    %c0_i32 = arith.constant 0 : i32
    %c0_i32_0 = arith.constant 0 : i32
    %c0_i32_1 = arith.constant 0 : i32
    return %c0_i32, %c0_i32_0 : i32, i32
  }
  func.func @transform_10(%arg0: i32) -> (i32, i32) {
    %c0_i32 = arith.constant 0 : i32
    %c0_i32_0 = arith.constant 0 : i32
    %c0_i32_1 = arith.constant 0 : i32
    return %c0_i32, %c0_i32_0 : i32, i32
  }
  func.func @transform_11(%arg0: i32) -> (i32, i32) {
    %c0_i32 = arith.constant 0 : i32
    %c0_i32_0 = arith.constant 0 : i32
    return %arg0, %c0_i32 : i32, i32
  }
}

</mosaic_0001>

<bundles_post_ra>
// kernel: net_forward.1
= control target key start
LH: loop header
LB: loop body
LE: loop exit
PB: predicated region body
PF: predicated region fallthrough
CT: control target
= control target key end

     0   :  { %16 = vsyncpa [#allocation3], 0  ;;  %s3326_s0 = inlined_call_operand.vmem [shape: f32[16,32], index: 0, kind: input, shape index: {}]   ;;  %s3327_s1 = inlined_call_operand.vmem [shape: bf16[32,256], index: 1, kind: input, shape index: {}]   ;;  %s3328_s2 = inlined_call_operand.vmem [shape: f32[1,256], index: 2, kind: input, shape index: {}]   ;;  %s3329_s3 = inlined_call_operand.hbm [shape: bf16[256,896], index: 3, kind: input, shape index: {}]   ;;  %s3330_s4 = inlined_call_operand.vmem [shape: f32[1,896], index: 4, kind: input, shape index: {}]   ;;  %s3331_s5 = inlined_call_operand.hbm [shape: bf16[896,256], index: 5, kind: input, shape index: {}]   ;;  %s3332_s6 = inlined_call_operand.vmem [shape: f32[1,256], index: 6, kind: input, shape index: {}]   ;;  %s3333_s7 = inlined_call_operand.vmem [shape: bf16[256,16], index: 7, kind: input, shape index: {}]   ;;  %s3334_s8 = inlined_call_operand.vmem [shape: f32[1,16], index: 8, kind: input, shape index: {}]   ;;  %s3335_s9 = inlined_call_operand.vmem [shape: f32[1,256], index: 9, kind: input, shape index: {}]   ;;  %s3336_s10 = inlined_call_operand.vmem [shape: f32[1,256], index: 10, kind: input, shape index: {}]   ;;  %s3337_s11 = inlined_call_operand.vmem [shape: f32[16,16], index: 11, kind: output, shape index: {}]  }
   0x1   :  { %17 = vsyncpa [#allocation5], 0  ;;  %s3018_s17 = smov [#allocation2]   ;;  %s2970_s21 = scalar_lea.hbm %s3329_s3, 14336 }
   0x2   :  { %s29_s18 = sshll.u32 %s3018_s17, 4  ;;  %p2971_p0 = scmp.ne.s32.totalorder %s3329_s3, %s2970_s21  ;;  %s30_s18 = int_to_ptr.vmem [resolvable:$true] %s29_s18 }
   0x3   :  { %p2974_p1 = scmp.lt.u32.totalorder %s2970_s21, %s3329_s3 }
   0x5   :  { %p2976_p2 = pnand %p2974_p1, %p2971_p0 }
   0x7   :  { %2979 = shalt.err (!%p2976_p2)
}
   0x8   :  { %s2980_s26 = scalar_lea.vmem %s30_s18, 14336  ;;  %p2985_p4 = scmp.lt.s32.totalorder %s30_s18, %s30_s18 }
   0x9   :  { %p2981_p3 = scmp.ne.s32.totalorder %s30_s18, %s2980_s26  ;;  %p2986_p5 = scmp.lt.s32.totalorder %s2980_s26, %s2980_s26 }
   0xb   :  { %p2987_p6 = por %p2986_p5, %p2985_p4 }
   0xd   :  { %p2988_p7 = pnand %p2987_p6, %p2981_p3 }
   0xf   :  { %2991 = shalt.err (!%p2988_p7)
}
  0x10   :  { %s3019_s27 = smov 448   ;;  %s3020_s28 = smov 28  }
  0x11   :  { %35 = dma.hbm_to_vmem [thread:$0]  %s3329_s3, 14336, %s30_s18, [#allocation3], %s3019_s27, %s3019_s27, %s3020_s28  }
  0x12   :  { %s3021_s12 = smov [#allocation4]   ;;  %s2992_s16 = scalar_lea.hbm %s3331_s5, 14336 }
  0x13   :  { %s43_s13 = sshll.u32 %s3021_s12, 4  ;;  %p2993_p8 = scmp.ne.s32.totalorder %s3331_s5, %s2992_s16  ;;  %s44_s13 = int_to_ptr.vmem [resolvable:$true] %s43_s13 }
  0x14   :  { %p2996_p9 = scmp.lt.u32.totalorder %s2992_s16, %s3331_s5 }
  0x16   :  { %p2998_p10 = pnand %p2996_p9, %p2993_p8 }
  0x18   :  { %3001 = shalt.err (!%p2998_p10)
}
  0x19   :  { %s3002_s22 = scalar_lea.vmem %s44_s13, 14336  ;;  %p3007_p12 = scmp.lt.s32.totalorder %s44_s13, %s44_s13 }
  0x1a   :  { %p3003_p11 = scmp.ne.s32.totalorder %s44_s13, %s3002_s22  ;;  %p3008_p13 = scmp.lt.s32.totalorder %s3002_s22, %s3002_s22 }
  0x1c   :  { %p3009_p0 = por %p3008_p13, %p3007_p12 }
  0x1e   :  { %p3010_p1 = pnand %p3009_p0, %p3003_p11 }
  0x20   :  { %3013 = shalt.err (!%p3010_p1)
}
  0x21   :  { %s3022_s3 = smov 128   ;;  %s3023_s18 = smov 8  }
  0x22   :  { %49 = dma.hbm_to_vmem [thread:$0]  %s3331_s5, 14336, %s44_s13, [#allocation5], %s3022_s3, %s3022_s3, %s3023_s18  }
  0x23   :  { %3014 = dma.done.wait [#allocation3], 14336  }
  0x24   :  { %3015 = vsyncadd [#allocation3], 4294952960 }
  0x25   :  { %3016 = dma.done.wait [#allocation5], 14336  }
  0x26   :  { %3017 = vsyncadd [#allocation5], 4294952960  ;;  %v3024_v0 = vmov 0   ;;  %v2574_v1 = vld [vmem:[%s3327_s1 + $0x4] ss:$8 sps:$4 sm:$0xff]   ;;  %vm108_vm0 = vcmask 261120   ;;  %v78_v24 = vlaneseq }
  0x27   :  { %144 = vmatprep.mubr.bf16.mxu1 %v3024_v0  ;;  %v2576_v2 = vld [vmem:[%s3327_s1] ss:$8 sps:$4 sm:$0xff]   ;;  %112 = vmatprep.subr.bf16.mxu1 %v2574_v1  ;;  %v2577_v3 = vld [vmem:[%s3327_s1 + $0x14] ss:$8 sps:$4 sm:$0xff]   ;;  %v2579_v4 = vld [vmem:[%s3327_s1 + $0x10] ss:$8 sps:$4 sm:$0xff]  }
  0x28   :  { %113 = vmatpush1.bf16.msra.mxu1 %v2576_v2  ;;  %v69_v5 = vld [vmem:[%s3326_s0] sm:$0xff]  ;;  %v70_v6 = vld [vmem:[%s3326_s0 + $0x8] sm:$0xff]  ;;  %v2585_v10 = vld [vmem:[#allocation2 + $0x3c] ss:$28 sps:$4 sm:$0xff]   ;;  %v3128_v25 = vshrl.u32 %v78_v24, 7  ;;  %vm2250_vm1 = vcmask 130048  }
  0x29   :  { %114 = vmatprep.subr.bf16.mxu1 %v2577_v3  ;;  %v71_v7 = vpack.c.bf16 %v70_v6, %v69_v5  ;;  %v2580_v8 = vld [vmem:[#allocation2] ss:$28 sps:$4 sm:$0xff]   ;;  %v2583_v11 = vld [vmem:[#allocation2 + $0x38] ss:$28 sps:$4 sm:$0xff]   ;;  %v2586_v13 = vld [vmem:[#allocation2 + $0x70] ss:$28 sps:$4 sm:$0xff]  }
  0x2a   :  { %v2582_v9 = vld [vmem:[#allocation2 + $0x4] ss:$28 sps:$4 sm:$0xff]   ;;  %v2588_v12 = vld [vmem:[#allocation2 + $0x74] ss:$28 sps:$4 sm:$0xff]   ;;  %v2591_v14 = vld [vmem:[#allocation2 + $0xac] ss:$28 sps:$4 sm:$0xff]  }
  0x2b   :  { %v2589_v15 = vld [vmem:[#allocation2 + $0xa8] ss:$28 sps:$4 sm:$0xff]   ;;  %v2592_v17 = vld [vmem:[#allocation2 + $0xe0] ss:$28 sps:$4 sm:$0xff]   ;;  %v2595_v19 = vld [vmem:[#allocation2 + $0x118] ss:$28 sps:$4 sm:$0xff]  }
  0x2c   :  { %115 = vmatpush1.bf16.msra.mxu1 %v2579_v4  ;;  %v2594_v16 = vld [vmem:[#allocation2 + $0xe4] ss:$28 sps:$4 sm:$0xff]   ;;  %v2597_v18 = vld [vmem:[#allocation2 + $0x11c] ss:$28 sps:$4 sm:$0xff]   ;;  %v2600_v20 = vld [vmem:[#allocation2 + $0x154] ss:$28 sps:$4 sm:$0xff]  }
  0x2d   :  { %970 = vmatprep.subr.bf16.mxu1 %v2582_v9  ;;  %v2598_v21 = vld [vmem:[#allocation2 + $0x150] ss:$28 sps:$4 sm:$0xff]   ;;  %v2601_v23 = vld [vmem:[#allocation2 + $0x188] ss:$28 sps:$4 sm:$0xff]   ;;  %v3131_v26 = vsub.s32 0, %v3128_v25  ;;  %v3137_v28 = vsub.s32 1, %v3128_v25 }
  0x2e   :  { %v2603_v22 = vld [vmem:[#allocation2 + $0x18c] ss:$28 sps:$4 sm:$0xff]   ;;  %v76_v27 = vld [vmem:[%s3328_s2] sm:$0x3]  ;;  %v2607_v53 = vld [vmem:[#allocation2 + $0x1d8] ss:$28 sps:$4 sm:$0xff]  }
  0x2f   :  { %2263 = vmatmul.mubr.msk.bf16.vlgmr.msra.gmra.mrb[0].mxu1 %vm108_vm0, %v71_v7  ;;  %v81_v29 = vrot.slane %v76_v27, %v3131_v26  ;;  %v85_v30 = vrot.slane %v76_v27, %v3137_v28  ;;  %v2606_v51 = vld [vmem:[#allocation2 + $0x1c4] ss:$28 sps:$4 sm:$0xff]   ;;  %v2608_v54 = vld [vmem:[#allocation2 + $0x18] ss:$28 sps:$4 sm:$0xff]   ;;  %2507 = vmatprep.subr.bf16.mxu0 %v2607_v53  ;;  %v2612_v57 = vld [vmem:[#allocation2 + $0x210] ss:$28 sps:$4 sm:$0xff]  }
  0x30   :  { %971 = vmatpush1.bf16.msra.mxu1 %v2580_v8  ;;  %v2604_v52 = vld [vmem:[#allocation2 + $0x1c0] ss:$28 sps:$4 sm:$0xff]   ;;  %2508 = vmatpush3.bf16.msra.mxu0 %v2608_v54  ;;  %v2609_v56 = vld [vmem:[#allocation2 + $0x1f8] ss:$28 sps:$4 sm:$0xff]   ;;  %v2613_v58 = vld [vmem:[#allocation2 + $0x50] ss:$28 sps:$4 sm:$0xff]  }
  0x31   :  { %972 = vmatprep.subr.bf16.mxu1 %v2585_v10  ;;  %v2611_v55 = vld [vmem:[#allocation2 + $0x1fc] ss:$28 sps:$4 sm:$0xff]   ;;  %2509 = vmatprep.subr.bf16.mxu0 %v2612_v57  ;;  %v2616_v59 = vld [vmem:[#allocation2 + $0x234] ss:$28 sps:$4 sm:$0xff]   ;;  %v2617_v61 = vld [vmem:[#allocation2 + $0x248] ss:$28 sps:$4 sm:$0xff]  }
  0x32   :  { %v2614_v60 = vld [vmem:[#allocation2 + $0x230] ss:$28 sps:$4 sm:$0xff]   ;;  %v2618_v62 = vld [vmem:[#allocation2 + $0x88] ss:$28 sps:$4 sm:$0xff]   ;;  %v2622_v2 = vld [vmem:[#allocation2 + $0x280] ss:$28 sps:$4 sm:$0xff]  }
  0x33   :  { %v2621_v63 = vld [vmem:[#allocation2 + $0x26c] ss:$28 sps:$4 sm:$0xff]   ;;  %v2623_v3 = vld [vmem:[#allocation2 + $0xc0] ss:$28 sps:$4 sm:$0xff]   ;;  %v2627_v6 = vld [vmem:[#allocation2 + $0x2b8] ss:$28 sps:$4 sm:$0xff]  }
  0x34   :  { %973 = vmatpush1.bf16.msra.mxu1 %v2583_v11  ;;  %2510 = vmatpush3.bf16.msra.mxu0 %v2613_v58  ;;  %v2619_v1 = vld [vmem:[#allocation2 + $0x268] ss:$28 sps:$4 sm:$0xff]   ;;  %v2624_v4 = vld [vmem:[#allocation2 + $0x2a0] ss:$28 sps:$4 sm:$0xff]   ;;  %v2628_v7 = vld [vmem:[#allocation2 + $0xf8] ss:$28 sps:$4 sm:$0xff]  }
  0x35   :  { %974 = vmatprep.subr.bf16.mxu1 %v2588_v12  ;;  %2511 = vmatprep.subr.bf16.mxu0 %v2617_v61  ;;  %v2626_v5 = vld [vmem:[#allocation2 + $0x2a4] ss:$28 sps:$4 sm:$0xff]   ;;  %v2631_v8 = vld [vmem:[#allocation2 + $0x2dc] ss:$28 sps:$4 sm:$0xff]   ;;  %v2632_v9 = vld [vmem:[#allocation2 + $0x2f0] ss:$28 sps:$4 sm:$0xff]  }
  0x36   :  { %v2629_v10 = vld [vmem:[#allocation2 + $0x2d8] ss:$28 sps:$4 sm:$0xff]   ;;  %v2633_v11 = vld [vmem:[#allocation2 + $0x130] ss:$28 sps:$4 sm:$0xff]  }
  0x37   :  { %v2636_v12 = vld [vmem:[#allocation2 + $0x314] ss:$28 sps:$4 sm:$0xff]  }
  0x38   :  { %975 = vmatpush1.bf16.msra.mxu1 %v2586_v13  ;;  %2512 = vmatpush3.bf16.msra.mxu0 %v2618_v62  ;;  %v2637_v13 = vld [vmem:[#allocation2 + $0x328] ss:$28 sps:$4 sm:$0xff]  }
  0x39   :  { %976 = vmatprep.subr.bf16.mxu1 %v2591_v14  ;;  %2513 = vmatprep.subr.bf16.mxu0 %v2622_v2  ;;  %v2634_v14 = vld [vmem:[#allocation2 + $0x310] ss:$28 sps:$4 sm:$0xff]   ;;  %v2644_v2 = vld [vmem:[#allocation2 + $0x8] ss:$28 sps:$4 sm:$0xff]  }
  0x3c   :  { %977 = vmatpush1.bf16.msra.mxu1 %v2589_v15  ;;  %2514 = vmatpush3.bf16.msra.mxu0 %v2623_v3  ;;  %v2638_v15 = vld [vmem:[#allocation2 + $0x168] ss:$28 sps:$4 sm:$0xff]  }
  0x3d   :  { %978 = vmatprep.subr.bf16.mxu1 %v2594_v16  ;;  %2515 = vmatprep.subr.bf16.mxu0 %v2627_v6  ;;  %v2641_v16 = vld [vmem:[#allocation2 + $0x34c] ss:$28 sps:$4 sm:$0xff]  }
  0x3e   :  { %v2742_v6 = vld [vmem:[#allocation4 + $0x4] ss:$8 sps:$4 sm:$0xff]  }
  0x40   :  { %979 = vmatpush1.bf16.msra.mxu1 %v2592_v17  ;;  %2516 = vmatpush3.bf16.msra.mxu0 %v2628_v7  ;;  %v2642_v17 = vld [vmem:[#allocation2 + $0x360] ss:$28 sps:$4 sm:$0xff]  }
  0x41   :  { %980 = vmatprep.subr.bf16.mxu1 %v2597_v18  ;;  %2517 = vmatprep.subr.bf16.mxu0 %v2632_v9  ;;  %v2639_v18 = vld [vmem:[#allocation2 + $0x348] ss:$28 sps:$4 sm:$0xff]   ;;  %v2647_v7 = vld [vmem:[#allocation2 + $0x40] ss:$28 sps:$4 sm:$0xff]  }
  0x42   :  { %v2652_v9 = vld [vmem:[#allocation2 + $0x7c] ss:$28 sps:$4 sm:$0xff]  }
  0x44   :  { %981 = vmatpush1.bf16.msra.mxu1 %v2595_v19  ;;  %2518 = vmatpush3.bf16.msra.mxu0 %v2633_v11  ;;  %v2643_v19 = vld [vmem:[#allocation2 + $0x1a0] ss:$28 sps:$4 sm:$0xff]   ;;  %v2748_v11 = vld [vmem:[#allocation4 + $0x24] ss:$8 sps:$4 sm:$0xff]  }
  0x45   :  { %982 = vmatprep.subr.bf16.mxu1 %v2600_v20  ;;  %2519 = vmatprep.subr.bf16.mxu0 %v2637_v13  ;;  %v2646_v20 = vld [vmem:[#allocation2 + $0xc] ss:$28 sps:$4 sm:$0xff]   ;;  %v2655_v13 = vld [vmem:[#allocation2 + $0xb4] ss:$28 sps:$4 sm:$0xff]  }
  0x48   :  { %983 = vmatpush1.bf16.msra.mxu1 %v2598_v21  ;;  %2520 = vmatpush3.bf16.msra.mxu0 %v2638_v15  ;;  %v2751_v15 = vld [vmem:[#allocation4 + $0x34] ss:$8 sps:$4 sm:$0xff]  }
  0x49   :  { %984 = vmatprep.subr.bf16.mxu1 %v2603_v22  ;;  %2521 = vmatprep.subr.bf16.mxu0 %v2642_v17  ;;  %v2658_v17 = vld [vmem:[#allocation2 + $0xec] ss:$28 sps:$4 sm:$0xff]  }
  0x4c   :  { %985 = vmatpush1.bf16.msra.mxu1 %v2601_v23  ;;  %2522 = vmatpush3.bf16.msra.mxu0 %v2643_v19  ;;  %v2754_v19 = vld [vmem:[#allocation4 + $0x44] ss:$8 sps:$4 sm:$0xff]  }
  0x4d   :  { %986 = vmatprep.subr.bf16.mxu1 %v2606_v51  ;;  %1838 = vmatprep.subr.bf16.mxu0 %v2742_v6  ;;  %v2700_v6 = vld [vmem:[#allocation2 + $0x84] ss:$28 sps:$4 sm:$0xff]  }
  0x50   :  { %987 = vmatpush1.bf16.msra.mxu1 %v2604_v52 }
  0x51   :  { %988 = vmatprep.subr.bf16.mxu1 %v2611_v55 }
  0x54   :  { %989 = vmatpush1.bf16.msra.mxu1 %v2609_v56 }
  0x55   :  { %990 = vmatprep.subr.bf16.mxu1 %v2616_v59 }
  0x58   :  { %991 = vmatpush1.bf16.msra.mxu1 %v2614_v60 }
  0x59   :  { %992 = vmatprep.subr.bf16.mxu1 %v2621_v63 }
  0x5c   :  { %993 = vmatpush1.bf16.msra.mxu1 %v2619_v1 }
  0x5d   :  { %994 = vmatprep.subr.bf16.mxu1 %v2626_v5  ;;  %v2740_v5 = vld [vmem:[#allocation4] ss:$8 sps:$4 sm:$0xff]  }
  0x60   :  { %995 = vmatpush1.bf16.msra.mxu1 %v2624_v4  ;;  %v2649_v4 = vld [vmem:[#allocation2 + $0x44] ss:$28 sps:$4 sm:$0xff]  }
  0x61   :  { %996 = vmatprep.subr.bf16.mxu1 %v2631_v8  ;;  %v2745_v8 = vld [vmem:[#allocation4 + $0x14] ss:$8 sps:$4 sm:$0xff]  }
  0x64   :  { %997 = vmatpush1.bf16.msra.mxu1 %v2629_v10  ;;  %v2743_v10 = vld [vmem:[#allocation4 + $0x10] ss:$8 sps:$4 sm:$0xff]  }
  0x65   :  { %998 = vmatprep.subr.bf16.mxu1 %v2636_v12  ;;  %v2650_v12 = vld [vmem:[#allocation2 + $0x78] ss:$28 sps:$4 sm:$0xff]  }
  0x68   :  { %999 = vmatpush1.bf16.msra.mxu1 %v2634_v14  ;;  %v2746_v14 = vld [vmem:[#allocation4 + $0x20] ss:$8 sps:$4 sm:$0xff]  }
  0x69   :  { %1000 = vmatprep.subr.bf16.mxu1 %v2641_v16  ;;  %v2653_v16 = vld [vmem:[#allocation2 + $0xb0] ss:$28 sps:$4 sm:$0xff]  }
  0x6c   :  { %1001 = vmatpush1.bf16.msra.mxu1 %v2639_v18  ;;  %v2749_v18 = vld [vmem:[#allocation4 + $0x30] ss:$8 sps:$4 sm:$0xff]  }
  0x6d   :  { %1013 = vmatprep.subr.bf16.mxu1 %v2646_v20  ;;  %v2656_v20 = vld [vmem:[#allocation2 + $0xe8] ss:$28 sps:$4 sm:$0xff]  }
 0x102   :  { %v146_v31 = vpop.f32.mrb[0].mxu1 }
 0x103   :  { %v147_v32 = vadd.f32 %v146_v31, %v81_v29  ;;  %v148_v33 = vpop.f32.mrb[1].mxu1 }
 0x104   :  { %v149_v34 = vadd.f32 %v148_v33, %v85_v30  ;;  %v150_v35 = vpop.f32.mrb[2].mxu1 }
 0x105   :  { %2924 = vtanh.f32 %v147_v32  ;;  %v151_v36 = vadd.f32 %v150_v35, %v81_v29  ;;  %v152_v37 = vpop.f32.mrb[3].mxu1 }
 0x106   :  { %2926 = vtanh.f32 %v149_v34  ;;  %v153_v38 = vadd.f32 %v152_v37, %v85_v30 }
 0x107   :  { %2928 = vtanh.f32 %v151_v36 }
 0x108   :  { %2930 = vtanh.f32 %v153_v38 }
 0x10f   :  { %v3141_v39 = vpop.eup %2924 }
 0x110   :  { %v3143_v40 = vpop.eup %2926  ;;  %v167_v41 = vmul.f32 %v3141_v39, %v3141_v39 }
 0x111   :  { %v3147_v42 = vpop.eup %2928  ;;  %v159_v43 = vadd.f32 %v3143_v40, %v3141_v39  ;;  %v168_v44 = vmul.f32 %v3143_v40, %v3143_v40 }
 0x112   :  { %v3153_v45 = vpop.eup %2930  ;;  %v169_v47 = vmul.f32 %v3147_v42, %v3147_v42 }
 0x113   :  { %160 = vadd.xlane.f32.xlu0 %v159_v43  ;;  %v171_v46 = vadd.f32 %v168_v44, %v167_v41  ;;  %v170_v48 = vmul.f32 %v3153_v45, %v3153_v45  ;;  %v162_v49 = vadd.f32 %v3153_v45, %v3147_v42  ;;  %v67_v43 = vld [vmem:[%s3335_s9] sm:$0x3] }
 0x114   :  { %v3165_v44 = vrot.slane %v67_v43, %v3137_v28 }
 0x115   :  { %172 = vadd.xlane.f32.xlu1 %v171_v46  ;;  %v174_v50 = vadd.f32 %v170_v48, %v169_v47  ;;  %v3168_v46 = vrot.slane %v67_v43, %v3131_v26  ;;  %v68_v48 = vld [vmem:[%s3336_s10] sm:$0x3] }
 0x116   :  { %v3180_v56 = vrot.slane %v68_v48, %v3137_v28  ;;  %v3183_v57 = vrot.slane %v68_v48, %v3131_v26  ;;  %v2673_v43 = vld [vmem:[#allocation2 + $0x204] ss:$28 sps:$4 sm:$0xff]   ;;  %v2769_v48 = vld [vmem:[#allocation4 + $0x94] ss:$8 sps:$4 sm:$0xff]  }
 0x117   :  { %163 = vadd.xlane.f32.xlu0 %v162_v49 }
 0x119   :  { %175 = vadd.xlane.f32.xlu1 %v174_v50 }
 0x1a0   :  { %v161_v21 = vpop.xlane.xlu0 %160 }
 0x1a1   :  { %v165_v22 = vmul.f32 0.005, %v161_v21  ;;  %v2661_v21 = vld [vmem:[#allocation2 + $0x124] ss:$28 sps:$4 sm:$0xff]  }
 0x1a2   :  { %v173_v23 = vpop.xlane.xlu1 %172 }
 0x1a3   :  { %v177_v24 = vmul.f32 0.005, %v173_v23  ;;  %v179_v27 = vmul.f32 %v165_v22, %v165_v22  ;;  %v189_v51 = vsub.f32 %v3141_v39, %v165_v22  ;;  %v190_v52 = vsub.f32 %v3143_v40, %v165_v22  ;;  %v2752_v22 = vld [vmem:[#allocation4 + $0x40] ss:$8 sps:$4 sm:$0xff]   ;;  %v2757_v23 = vld [vmem:[#allocation4 + $0x54] ss:$8 sps:$4 sm:$0xff]  }
 0x1a4   :  { %v164_v29 = vpop.xlane.xlu0 %163 }
 0x1a5   :  { %v181_v30 = vsub.f32 %v177_v24, %v179_v27  ;;  %v166_v31 = vmul.f32 0.005, %v164_v29  ;;  %v2659_v24 = vld [vmem:[#allocation2 + $0x120] ss:$28 sps:$4 sm:$0xff]   ;;  %v2755_v29 = vld [vmem:[#allocation4 + $0x50] ss:$8 sps:$4 sm:$0xff]  }
 0x1a6   :  { %v176_v32 = vpop.xlane.xlu1 %175  ;;  %v2664_v27 = vld [vmem:[#allocation2 + $0x15c] ss:$28 sps:$4 sm:$0xff]  }
 0x1a7   :  { %v183_v33 = vmax.f32 %v181_v30, 0.0  ;;  %v178_v34 = vmul.f32 0.005, %v176_v32  ;;  %v180_v35 = vmul.f32 %v166_v31, %v166_v31  ;;  %v191_v54 = vsub.f32 %v3147_v42, %v166_v31  ;;  %v2760_v30 = vld [vmem:[#allocation4 + $0x64] ss:$8 sps:$4 sm:$0xff]  }
 0x1a8   :  { %v192_v55 = vsub.f32 %v3153_v45, %v166_v31  ;;  %v2662_v31 = vld [vmem:[#allocation2 + $0x158] ss:$28 sps:$4 sm:$0xff]  }
 0x1a9   :  { %v185_v36 = vadd.f32 1e-05, %v183_v33  ;;  %v182_v37 = vsub.f32 %v178_v34, %v180_v35  ;;  %v2667_v32 = vld [vmem:[#allocation2 + $0x194] ss:$28 sps:$4 sm:$0xff]   ;;  %v2758_v33 = vld [vmem:[#allocation4 + $0x60] ss:$8 sps:$4 sm:$0xff]  }
 0x1aa   :  { %v2763_v34 = vld [vmem:[#allocation4 + $0x74] ss:$8 sps:$4 sm:$0xff]   ;;  %v2665_v35 = vld [vmem:[#allocation2 + $0x190] ss:$28 sps:$4 sm:$0xff]  }
 0x1ab   :  { %2932 = vrsqrt.f32 %v185_v36  ;;  %v184_v38 = vmax.f32 %v182_v37, 0.0  ;;  %v2670_v36 = vld [vmem:[#allocation2 + $0x1cc] ss:$28 sps:$4 sm:$0xff]   ;;  %v2761_v37 = vld [vmem:[#allocation4 + $0x70] ss:$8 sps:$4 sm:$0xff]  }
 0x1ad   :  { %v186_v41 = vadd.f32 1e-05, %v184_v38  ;;  %v2766_v38 = vld [vmem:[#allocation4 + $0x84] ss:$8 sps:$4 sm:$0xff]  }
 0x1af   :  { %2934 = vrsqrt.f32 %v186_v41  ;;  %v2668_v41 = vld [vmem:[#allocation2 + $0x1c8] ss:$28 sps:$4 sm:$0xff]  }
 0x1b5   :  { %v2933_v47 = vpop.eup %2932 }
 0x1b6   :  { %v205_v49 = vmul.f32 %v2933_v47, %v3165_v44  ;;  %v204_v50 = vmul.f32 %v2933_v47, %v3168_v46  ;;  %v2764_v47 = vld [vmem:[#allocation4 + $0x80] ss:$8 sps:$4 sm:$0xff]  }
 0x1b8   :  { %v209_v59 = vmul.f32 %v205_v49, %v190_v52  ;;  %v208_v61 = vmul.f32 %v204_v50, %v189_v51  ;;  %v2671_v49 = vld [vmem:[#allocation2 + $0x200] ss:$28 sps:$4 sm:$0xff]   ;;  %v2767_v51 = vld [vmem:[#allocation4 + $0x90] ss:$8 sps:$4 sm:$0xff]   ;;  %v2772_v52 = vld [vmem:[#allocation4 + $0xa4] ss:$8 sps:$4 sm:$0xff]  }
 0x1b9   :  { %v2935_v53 = vpop.eup %2934  ;;  %v2676_v50 = vld [vmem:[#allocation2 + $0x23c] ss:$28 sps:$4 sm:$0xff]  }
 0x1ba   :  { %v207_v58 = vmul.f32 %v2935_v53, %v3165_v44  ;;  %v206_v60 = vmul.f32 %v2935_v53, %v3168_v46  ;;  %v224_v40 = vadd.f32 %v3180_v56, %v209_v59  ;;  %v223_v45 = vadd.f32 %v3183_v57, %v208_v61  ;;  %v2674_v53 = vld [vmem:[#allocation2 + $0x238] ss:$28 sps:$4 sm:$0xff]   ;;  %v2682_v59 = vld [vmem:[#allocation2 + $0x2ac] ss:$28 sps:$4 sm:$0xff]   ;;  %v2685_v61 = vld [vmem:[#allocation2 + $0x2e4] ss:$28 sps:$4 sm:$0xff]  }
 0x1bc   :  { %v211_v39 = vmul.f32 %v207_v58, %v192_v55  ;;  %v210_v62 = vmul.f32 %v206_v60, %v191_v54  ;;  %v2679_v54 = vld [vmem:[#allocation2 + $0x274] ss:$28 sps:$4 sm:$0xff]   ;;  %v2770_v55 = vld [vmem:[#allocation4 + $0xa0] ss:$8 sps:$4 sm:$0xff]  }
 0x1bd   :  { %v2677_v58 = vld [vmem:[#allocation2 + $0x270] ss:$28 sps:$4 sm:$0xff]   ;;  %v2680_v60 = vld [vmem:[#allocation2 + $0x2a8] ss:$28 sps:$4 sm:$0xff]  }
 0x1be   :  { %v226_v42 = vadd.f32 %v3180_v56, %v211_v39  ;;  %v225_v63 = vadd.f32 %v3183_v57, %v210_v62  ;;  %v2683_v39 = vld [vmem:[#allocation2 + $0x2e0] ss:$28 sps:$4 sm:$0xff]  }
 0x1bf   :  { %v2688_v62 = vld [vmem:[#allocation2 + $0x31c] ss:$28 sps:$4 sm:$0xff]  }
 0x1c0   :  { %v3191_v1 = vpack.c.bf16 %v226_v42, %v224_v40  ;;  %v3193_v3 = vpack.c.bf16 %v225_v63, %v223_v45  ;;  %v2686_v40 = vld [vmem:[#allocation2 + $0x318] ss:$28 sps:$4 sm:$0xff]   ;;  %v2689_v45 = vld [vmem:[#allocation2 + $0x350] ss:$28 sps:$4 sm:$0xff]  }
 0x1c1   :  { %v2691_v42 = vld [vmem:[#allocation2 + $0x354] ss:$28 sps:$4 sm:$0xff]  }
 0x1c2   :  { %1002 = vmatprep.mubr.bf16.mxu1 %v3191_v1  ;;  %1131 = vmatprep.mubr.bf16.mxu0 %v3191_v1  ;;  %v2694_v63 = vld [vmem:[#allocation2 + $0x14] ss:$28 sps:$4 sm:$0xff]  }
 0x1c3   :  { %1003 = vmatmul.mubr.bf16.vlgmr.msra.gmra.mrb[4].mxu1 %v3193_v3  ;;  %1132 = vmatmul.mubr.bf16.vlgmr.msra.gmra.mrb[0].mxu0 %v3193_v3 }
 0x1c4   :  { %1014 = vmatpush1.bf16.msra.mxu1 %v2644_v2  ;;  %1045 = vmatprep.mubr.bf16.mxu1 %v3191_v1  ;;  %v2692_v2 = vld [vmem:[#allocation2 + $0x10] ss:$28 sps:$4 sm:$0xff]  }
 0x1c5   :  { %1015 = vmatprep.subr.bf16.mxu1 %v2649_v4  ;;  %1839 = vmatpush1.bf16.msra.mxu0 %v2740_v5  ;;  %v2697_v4 = vld [vmem:[#allocation2 + $0x4c] ss:$28 sps:$4 sm:$0xff]  }
 0x1c6   :  { %1840 = vmatprep.subr.bf16.mxu0 %v2745_v8  ;;  %v2695_v5 = vld [vmem:[#allocation2 + $0x48] ss:$28 sps:$4 sm:$0xff]   ;;  %v2703_v8 = vld [vmem:[#allocation2 + $0xbc] ss:$28 sps:$4 sm:$0xff]  }
 0x1c8   :  { %1016 = vmatpush1.bf16.msra.mxu1 %v2647_v7  ;;  %v2698_v7 = vld [vmem:[#allocation2 + $0x80] ss:$28 sps:$4 sm:$0xff]  }
 0x1c9   :  { %1017 = vmatprep.subr.bf16.mxu1 %v2652_v9  ;;  %1841 = vmatpush1.bf16.msra.mxu0 %v2743_v10  ;;  %v2701_v9 = vld [vmem:[#allocation2 + $0xb8] ss:$28 sps:$4 sm:$0xff]  }
 0x1ca   :  { %1842 = vmatprep.subr.bf16.mxu0 %v2748_v11  ;;  %v2706_v10 = vld [vmem:[#allocation2 + $0xf4] ss:$28 sps:$4 sm:$0xff]  }
 0x1cb   :  { %v2704_v11 = vld [vmem:[#allocation2 + $0xf0] ss:$28 sps:$4 sm:$0xff]  }
 0x1cc   :  { %1018 = vmatpush1.bf16.msra.mxu1 %v2650_v12  ;;  %v2709_v12 = vld [vmem:[#allocation2 + $0x12c] ss:$28 sps:$4 sm:$0xff]  }
 0x1cd   :  { %1019 = vmatprep.subr.bf16.mxu1 %v2655_v13  ;;  %1843 = vmatpush1.bf16.msra.mxu0 %v2746_v14  ;;  %v2707_v13 = vld [vmem:[#allocation2 + $0x128] ss:$28 sps:$4 sm:$0xff]  }
 0x1ce   :  { %1844 = vmatprep.subr.bf16.mxu0 %v2751_v15  ;;  %v2712_v14 = vld [vmem:[#allocation2 + $0x164] ss:$28 sps:$4 sm:$0xff]   ;;  %v2773_v15 = vld [vmem:[#allocation4 + $0xb0] ss:$8 sps:$4 sm:$0xff]  }
 0x1d0   :  { %1020 = vmatpush1.bf16.msra.mxu1 %v2653_v16  ;;  %v2710_v16 = vld [vmem:[#allocation2 + $0x160] ss:$28 sps:$4 sm:$0xff]  }
 0x1d1   :  { %1021 = vmatprep.subr.bf16.mxu1 %v2658_v17  ;;  %1845 = vmatpush1.bf16.msra.mxu0 %v2749_v18  ;;  %v2715_v17 = vld [vmem:[#allocation2 + $0x19c] ss:$28 sps:$4 sm:$0xff]   ;;  %v2778_v18 = vld [vmem:[#allocation4 + $0xc4] ss:$8 sps:$4 sm:$0xff]  }
 0x1d2   :  { %1846 = vmatprep.subr.bf16.mxu0 %v2754_v19  ;;  %v2776_v19 = vld [vmem:[#allocation4 + $0xc0] ss:$8 sps:$4 sm:$0xff]  }
 0x1d4   :  { %1022 = vmatpush1.bf16.msra.mxu1 %v2656_v20  ;;  %v2713_v20 = vld [vmem:[#allocation2 + $0x198] ss:$28 sps:$4 sm:$0xff]  }
 0x1d5   :  { %1023 = vmatprep.subr.bf16.mxu1 %v2661_v21  ;;  %1847 = vmatpush1.bf16.msra.mxu0 %v2752_v22  ;;  %v2718_v21 = vld [vmem:[#allocation2 + $0x1d4] ss:$28 sps:$4 sm:$0xff]  }
 0x1d6   :  { %1848 = vmatprep.subr.bf16.mxu0 %v2757_v23  ;;  %v2781_v22 = vld [vmem:[#allocation4 + $0xd4] ss:$8 sps:$4 sm:$0xff]   ;;  %v2779_v23 = vld [vmem:[#allocation4 + $0xd0] ss:$8 sps:$4 sm:$0xff]  }
 0x1d8   :  { %1024 = vmatpush1.bf16.msra.mxu1 %v2659_v24  ;;  %v2716_v24 = vld [vmem:[#allocation2 + $0x1d0] ss:$28 sps:$4 sm:$0xff]  }
 0x1d9   :  { %1025 = vmatprep.subr.bf16.mxu1 %v2664_v27  ;;  %1849 = vmatpush1.bf16.msra.mxu0 %v2755_v29  ;;  %v2782_v27 = vld [vmem:[#allocation4 + $0xe0] ss:$8 sps:$4 sm:$0xff]   ;;  %v2784_v29 = vld [vmem:[#allocation4 + $0xe4] ss:$8 sps:$4 sm:$0xff]  }
 0x1da   :  { %1850 = vmatprep.subr.bf16.mxu0 %v2760_v30  ;;  %v2721_v30 = vld [vmem:[#allocation2 + $0x20c] ss:$28 sps:$4 sm:$0xff]  }
 0x1dc   :  { %1026 = vmatpush1.bf16.msra.mxu1 %v2662_v31  ;;  %v2787_v31 = vld [vmem:[#allocation4 + $0xf4] ss:$8 sps:$4 sm:$0xff]  }
 0x1dd   :  { %1027 = vmatprep.subr.bf16.mxu1 %v2667_v32  ;;  %1851 = vmatpush1.bf16.msra.mxu0 %v2758_v33  ;;  %v2719_v32 = vld [vmem:[#allocation2 + $0x208] ss:$28 sps:$4 sm:$0xff]   ;;  %v2785_v33 = vld [vmem:[#allocation4 + $0xf0] ss:$8 sps:$4 sm:$0xff]  }
 0x1de   :  { %1852 = vmatprep.subr.bf16.mxu0 %v2763_v34  ;;  %v2724_v34 = vld [vmem:[#allocation2 + $0x244] ss:$28 sps:$4 sm:$0xff]  }
 0x1e0   :  { %1028 = vmatpush1.bf16.msra.mxu1 %v2665_v35  ;;  %v2722_v35 = vld [vmem:[#allocation2 + $0x240] ss:$28 sps:$4 sm:$0xff]  }
 0x1e1   :  { %1029 = vmatprep.subr.bf16.mxu1 %v2670_v36  ;;  %1853 = vmatpush1.bf16.msra.mxu0 %v2761_v37  ;;  %v2727_v36 = vld [vmem:[#allocation2 + $0x27c] ss:$28 sps:$4 sm:$0xff]   ;;  %v2790_v37 = vld [vmem:[#allocation4 + $0x104] ss:$8 sps:$4 sm:$0xff]  }
 0x1e2   :  { %1854 = vmatprep.subr.bf16.mxu0 %v2766_v38  ;;  %v2725_v38 = vld [vmem:[#allocation2 + $0x278] ss:$28 sps:$4 sm:$0xff]  }
 0x1e4   :  { %1030 = vmatpush1.bf16.msra.mxu1 %v2668_v41  ;;  %v2730_v41 = vld [vmem:[#allocation2 + $0x2b4] ss:$28 sps:$4 sm:$0xff]  }
 0x1e5   :  { %1031 = vmatprep.subr.bf16.mxu1 %v2673_v43  ;;  %1855 = vmatpush1.bf16.msra.mxu0 %v2764_v47  ;;  %v2728_v43 = vld [vmem:[#allocation2 + $0x2b0] ss:$28 sps:$4 sm:$0xff]  }
 0x1e6   :  { %1856 = vmatprep.subr.bf16.mxu0 %v2769_v48  ;;  %v2733_v47 = vld [vmem:[#allocation2 + $0x2ec] ss:$28 sps:$4 sm:$0xff]  }
 0x1e7   :  { %v2731_v48 = vld [vmem:[#allocation2 + $0x2e8] ss:$28 sps:$4 sm:$0xff]  }
 0x1e8   :  { %1032 = vmatpush1.bf16.msra.mxu1 %v2671_v49  ;;  %v2736_v49 = vld [vmem:[#allocation2 + $0x324] ss:$28 sps:$4 sm:$0xff]  }
 0x1e9   :  { %1033 = vmatprep.subr.bf16.mxu1 %v2676_v50  ;;  %1857 = vmatpush1.bf16.msra.mxu0 %v2767_v51  ;;  %v2734_v50 = vld [vmem:[#allocation2 + $0x320] ss:$28 sps:$4 sm:$0xff]  }
 0x1ea   :  { %1858 = vmatprep.subr.bf16.mxu0 %v2772_v52  ;;  %v2739_v51 = vld [vmem:[#allocation2 + $0x35c] ss:$28 sps:$4 sm:$0xff]  }
 0x1eb   :  { %v2737_v52 = vld [vmem:[#allocation2 + $0x358] ss:$28 sps:$4 sm:$0xff]  }
 0x1ec   :  { %1034 = vmatpush1.bf16.msra.mxu1 %v2674_v53  ;;  %v3206_v53 = vld [vmem:[%s3330_s4] sm:$0xff] }
 0x1ed   :  { %1035 = vmatprep.subr.bf16.mxu1 %v2679_v54  ;;  %1859 = vmatpush1.bf16.msra.mxu0 %v2770_v55  ;;  %v385_v54 = vsub.s32 6, %v3128_v25  ;;  %v362_v55 = vrot.slane %v3206_v53, %v3131_v26 }
 0x1f0   :  { %1036 = vmatpush1.bf16.msra.mxu1 %v2677_v58 }
 0x1f1   :  { %1037 = vmatprep.subr.bf16.mxu1 %v2682_v59 }
 0x1f4   :  { %1038 = vmatpush1.bf16.msra.mxu1 %v2680_v60  ;;  %v366_v60 = vrot.slane %v3206_v53, %v3137_v28 }
 0x1f5   :  { %1039 = vmatprep.subr.bf16.mxu1 %v2685_v61 }
 0x1f8   :  { %1040 = vmatpush1.bf16.msra.mxu1 %v2683_v39 }
 0x1f9   :  { %1041 = vmatprep.subr.bf16.mxu1 %v2688_v62  ;;  %v386_v62 = vrot.slane %v3206_v53, %v385_v54 }
 0x1fc   :  { %1042 = vmatpush1.bf16.msra.mxu1 %v2686_v40 }
 0x1fd   :  { %1043 = vmatprep.subr.bf16.mxu1 %v2691_v42 }
 0x200   :  { %1044 = vmatpush1.bf16.msra.mxu1 %v2689_v45 }
 0x201   :  { %1056 = vmatprep.subr.bf16.mxu1 %v2694_v63 }
 0x203   :  { %1046 = vmatmul.mubr.bf16.vlgmr.msra.gmra.mrb[8].mxu1 %v3193_v3 }
 0x204   :  { %1057 = vmatpush1.bf16.msra.mxu1 %v2692_v2  ;;  %1088 = vmatprep.mubr.bf16.mxu1 %v3191_v1  ;;  %v2775_v1 = vld [vmem:[#allocation4 + $0xb4] ss:$8 sps:$4 sm:$0xff]  }
 0x205   :  { %1058 = vmatprep.subr.bf16.mxu1 %v2697_v4  ;;  %1860 = vmatprep.subr.bf16.mxu0 %v2775_v1  ;;  %v2793_v1 = vld [vmem:[#allocation4 + $0x114] ss:$8 sps:$4 sm:$0xff]  }
 0x206   :  { %1861 = vmatpush1.bf16.msra.mxu0 %v2773_v15 }
 0x207   :  { %1862 = vmatprep.subr.bf16.mxu0 %v2778_v18  ;;  %v2794_v18 = vld [vmem:[#allocation4 + $0x120] ss:$8 sps:$4 sm:$0xff]  }
 0x208   :  { %1059 = vmatpush1.bf16.msra.mxu1 %v2695_v5 }
 0x209   :  { %1060 = vmatprep.subr.bf16.mxu1 %v2700_v6 }
 0x20a   :  { %1863 = vmatpush1.bf16.msra.mxu0 %v2776_v19  ;;  %v2799_v19 = vld [vmem:[#allocation4 + $0x134] ss:$8 sps:$4 sm:$0xff]  }
 0x20b   :  { %1864 = vmatprep.subr.bf16.mxu0 %v2781_v22  ;;  %v2800_v22 = vld [vmem:[#allocation4 + $0x140] ss:$8 sps:$4 sm:$0xff]  }
 0x20c   :  { %1061 = vmatpush1.bf16.msra.mxu1 %v2698_v7 }
 0x20d   :  { %1062 = vmatprep.subr.bf16.mxu1 %v2703_v8 }
 0x20e   :  { %1865 = vmatpush1.bf16.msra.mxu0 %v2779_v23  ;;  %v2805_v23 = vld [vmem:[#allocation4 + $0x154] ss:$8 sps:$4 sm:$0xff]  }
 0x20f   :  { %1866 = vmatprep.subr.bf16.mxu0 %v2784_v29  ;;  %v2806_v29 = vld [vmem:[#allocation4 + $0x160] ss:$8 sps:$4 sm:$0xff]  }
 0x210   :  { %1063 = vmatpush1.bf16.msra.mxu1 %v2701_v9 }
 0x211   :  { %1064 = vmatprep.subr.bf16.mxu1 %v2706_v10 }
 0x212   :  { %1867 = vmatpush1.bf16.msra.mxu0 %v2782_v27  ;;  %v2808_v27 = vld [vmem:[#allocation4 + $0x164] ss:$8 sps:$4 sm:$0xff]  }
 0x213   :  { %1868 = vmatprep.subr.bf16.mxu0 %v2787_v31  ;;  %v2809_v31 = vld [vmem:[#allocation4 + $0x170] ss:$8 sps:$4 sm:$0xff]  }
 0x214   :  { %1065 = vmatpush1.bf16.msra.mxu1 %v2704_v11 }
 0x215   :  { %1066 = vmatprep.subr.bf16.mxu1 %v2709_v12 }
 0x216   :  { %1869 = vmatpush1.bf16.msra.mxu0 %v2785_v33  ;;  %v2812_v33 = vld [vmem:[#allocation4 + $0x180] ss:$8 sps:$4 sm:$0xff]  }
 0x217   :  { %1881 = vmatprep.subr.bf16.mxu0 %v2790_v37  ;;  %v2818_v37 = vld [vmem:[#allocation4 + $0x1a0] ss:$8 sps:$4 sm:$0xff]  }
 0x218   :  { %1067 = vmatpush1.bf16.msra.mxu1 %v2707_v13  ;;  %v2788_v13 = vld [vmem:[#allocation4 + $0x100] ss:$8 sps:$4 sm:$0xff]  }
 0x219   :  { %1068 = vmatprep.subr.bf16.mxu1 %v2712_v14 }
 0x21c   :  { %1069 = vmatpush1.bf16.msra.mxu1 %v2710_v16  ;;  %v2791_v16 = vld [vmem:[#allocation4 + $0x110] ss:$8 sps:$4 sm:$0xff]  }
 0x21d   :  { %1070 = vmatprep.subr.bf16.mxu1 %v2715_v17  ;;  %v2796_v17 = vld [vmem:[#allocation4 + $0x124] ss:$8 sps:$4 sm:$0xff]  }
 0x220   :  { %1071 = vmatpush1.bf16.msra.mxu1 %v2713_v20  ;;  %v2797_v20 = vld [vmem:[#allocation4 + $0x130] ss:$8 sps:$4 sm:$0xff]  }
 0x221   :  { %1072 = vmatprep.subr.bf16.mxu1 %v2718_v21  ;;  %v2802_v21 = vld [vmem:[#allocation4 + $0x144] ss:$8 sps:$4 sm:$0xff]  }
 0x224   :  { %1073 = vmatpush1.bf16.msra.mxu1 %v2716_v24  ;;  %v2803_v24 = vld [vmem:[#allocation4 + $0x150] ss:$8 sps:$4 sm:$0xff]  }
 0x225   :  { %1074 = vmatprep.subr.bf16.mxu1 %v2721_v30  ;;  %v2811_v30 = vld [vmem:[#allocation4 + $0x174] ss:$8 sps:$4 sm:$0xff]  }
 0x228   :  { %1075 = vmatpush1.bf16.msra.mxu1 %v2719_v32  ;;  %v2814_v32 = vld [vmem:[#allocation4 + $0x184] ss:$8 sps:$4 sm:$0xff]  }
 0x229   :  { %1076 = vmatprep.subr.bf16.mxu1 %v2724_v34  ;;  %v2817_v34 = vld [vmem:[#allocation4 + $0x194] ss:$8 sps:$4 sm:$0xff]  }
 0x22c   :  { %1077 = vmatpush1.bf16.msra.mxu1 %v2722_v35  ;;  %v2815_v35 = vld [vmem:[#allocation4 + $0x190] ss:$8 sps:$4 sm:$0xff]  }
 0x22d   :  { %1078 = vmatprep.subr.bf16.mxu1 %v2727_v36  ;;  %v2820_v36 = vld [vmem:[#allocation4 + $0x1a4] ss:$8 sps:$4 sm:$0xff]  }
 0x230   :  { %1079 = vmatpush1.bf16.msra.mxu1 %v2725_v38  ;;  %v369_v38 = vsub.s32 2, %v3128_v25 }
 0x231   :  { %1080 = vmatprep.subr.bf16.mxu1 %v2730_v41  ;;  %v2823_v41 = vld [vmem:[#allocation4 + $0x1b4] ss:$8 sps:$4 sm:$0xff]  }
 0x234   :  { %1081 = vmatpush1.bf16.msra.mxu1 %v2728_v43  ;;  %v373_v43 = vsub.s32 3, %v3128_v25 }
 0x235   :  { %1082 = vmatprep.subr.bf16.mxu1 %v2733_v47  ;;  %v2821_v47 = vld [vmem:[#allocation4 + $0x1b0] ss:$8 sps:$4 sm:$0xff]  }
 0x238   :  { %1083 = vmatpush1.bf16.msra.mxu1 %v2731_v48  ;;  %v370_v48 = vrot.slane %v3206_v53, %v369_v38 }
 0x239   :  { %1084 = vmatprep.subr.bf16.mxu1 %v2736_v49  ;;  %v2826_v49 = vld [vmem:[#allocation4 + $0x1c4] ss:$8 sps:$4 sm:$0xff]  }
 0x23c   :  { %1085 = vmatpush1.bf16.msra.mxu1 %v2734_v50 }
 0x23d   :  { %1086 = vmatprep.subr.bf16.mxu1 %v2739_v51  ;;  %v374_v51 = vrot.slane %v3206_v53, %v373_v43 }
 0x240   :  { %1087 = vmatpush1.bf16.msra.mxu1 %v2737_v52 }
 0x243   :  { %1089 = vmatmul.mubr.bf16.vlgmr.msra.gmra.mrb[12].mxu1 %v3193_v3 }
 0x296   :  { %v1004_v58 = vpop.f32.mrb[4].mxu1  ;;  %v2523_v59 = vpop.f32.mrb[0].mxu0 }
 0x297   :  { %v1006_v61 = vpop.f32.mrb[5].mxu1  ;;  %v2524_v39 = vpop.f32.mrb[1].mxu0  ;;  %v1005_v45 = vadd.f32 %v1004_v58, %v362_v55 }
 0x298   :  { %v2525_v3 = vadd.f32 %v2524_v39, %v2523_v59  ;;  %v1008_v40 = vpop.f32.mrb[6].mxu1  ;;  %v2526_v42 = vpop.f32.mrb[2].mxu0  ;;  %v1007_v5 = vadd.f32 %v1006_v61, %v366_v60  ;;  %v2829_v61 = vld [vmem:[#allocation4 + $0x1d4] ss:$8 sps:$4 sm:$0xff]  }
 0x299   :  { %v1009_v63 = vadd.f32 %v1008_v40, %v362_v55  ;;  %v1010_v2 = vpop.f32.mrb[7].mxu1  ;;  %v2527_v4 = vpop.f32.mrb[3].mxu0  ;;  %v2824_v55 = vld [vmem:[#allocation4 + $0x1c0] ss:$8 sps:$4 sm:$0xff]  }
 0x29a   :  { %v1011_v6 = vadd.f32 %v1010_v2, %v366_v60  ;;  %v2528_v7 = vadd.f32 %v2527_v4, %v2526_v42  ;;  %v3214_v9 = vadd.f32 %v2525_v3, %v386_v62  ;;  %v2827_v42 = vld [vmem:[#allocation4 + $0x1d0] ss:$8 sps:$4 sm:$0xff]   ;;  %v2835_v2 = vld [vmem:[#allocation4 + $0x1f4] ss:$8 sps:$4 sm:$0xff]  }
 0x29b   :  { %v1140_v8 = vpack.c.bf16 %v1009_v63, %v1005_v45  ;;  %v2832_v45 = vld [vmem:[#allocation4 + $0x1e4] ss:$8 sps:$4 sm:$0xff]   ;;  %v2830_v63 = vld [vmem:[#allocation4 + $0x1e0] ss:$8 sps:$4 sm:$0xff]   ;;  %v2833_v4 = vld [vmem:[#allocation4 + $0x1f0] ss:$8 sps:$4 sm:$0xff]  }
 0x29c   :  { %v1141_v10 = vpack.c.bf16 %v1011_v6, %v1007_v5  ;;  %v3216_v11 = vadd.f32 %v2528_v7, %v386_v62  ;;  %v2838_v5 = vld [vmem:[#allocation4 + $0x204] ss:$8 sps:$4 sm:$0xff]   ;;  %v2836_v6 = vld [vmem:[#allocation4 + $0x200] ss:$8 sps:$4 sm:$0xff]  }
 0x29e   :  { %2936 = vtanh.bf16 %v1141_v10  ;;  %v1146_v12 = vpack.c.bf16 %v3216_v11, %v3214_v9 }
 0x29f   :  { %2938 = vtanh.bf16 %v1140_v8  ;;  %v2841_v8 = vld [vmem:[#allocation4 + $0x214] ss:$8 sps:$4 sm:$0xff]  }
 0x2a9   :  { %v2937_v14 = vpop.eup %2936 }
 0x2aa   :  { %v2939_v15 = vpop.eup %2938  ;;  %1870 = vmatprep.mubr.bf16.mxu0 %v2937_v14  ;;  %v2844_v14 = vld [vmem:[#allocation4 + $0x224] ss:$8 sps:$4 sm:$0xff]  }
 0x2ab   :  { %1871 = vmatmul.mubr.bf16.vlgmr.msra.gmra.mrb[4].mxu0 %v2939_v15  ;;  %v2847_v15 = vld [vmem:[#allocation4 + $0x234] ss:$8 sps:$4 sm:$0xff]  }
 0x2ac   :  { %1882 = vmatpush1.bf16.msra.mxu0 %v2788_v13  ;;  %v2839_v13 = vld [vmem:[#allocation4 + $0x210] ss:$8 sps:$4 sm:$0xff]  }
 0x2ad   :  { %1883 = vmatprep.subr.bf16.mxu0 %v2793_v1  ;;  %v2842_v1 = vld [vmem:[#allocation4 + $0x220] ss:$8 sps:$4 sm:$0xff]  }
 0x2b0   :  { %1884 = vmatpush1.bf16.msra.mxu0 %v2791_v16  ;;  %v2845_v16 = vld [vmem:[#allocation4 + $0x230] ss:$8 sps:$4 sm:$0xff]  }
 0x2b1   :  { %1885 = vmatprep.subr.bf16.mxu0 %v2796_v17  ;;  %v2850_v17 = vld [vmem:[#allocation4 + $0x244] ss:$8 sps:$4 sm:$0xff]  }
 0x2b4   :  { %1886 = vmatpush1.bf16.msra.mxu0 %v2794_v18  ;;  %v2848_v18 = vld [vmem:[#allocation4 + $0x240] ss:$8 sps:$4 sm:$0xff]  }
 0x2b5   :  { %1887 = vmatprep.subr.bf16.mxu0 %v2799_v19  ;;  %v2853_v19 = vld [vmem:[#allocation4 + $0x254] ss:$8 sps:$4 sm:$0xff]  }
 0x2b8   :  { %1888 = vmatpush1.bf16.msra.mxu0 %v2797_v20  ;;  %v2851_v20 = vld [vmem:[#allocation4 + $0x250] ss:$8 sps:$4 sm:$0xff]  }
 0x2b9   :  { %1889 = vmatprep.subr.bf16.mxu0 %v2802_v21  ;;  %v2856_v21 = vld [vmem:[#allocation4 + $0x264] ss:$8 sps:$4 sm:$0xff]  }
 0x2bc   :  { %1890 = vmatpush1.bf16.msra.mxu0 %v2800_v22  ;;  %v2854_v22 = vld [vmem:[#allocation4 + $0x260] ss:$8 sps:$4 sm:$0xff]  }
 0x2bd   :  { %1891 = vmatprep.subr.bf16.mxu0 %v2805_v23  ;;  %v2859_v23 = vld [vmem:[#allocation4 + $0x274] ss:$8 sps:$4 sm:$0xff]  }
 0x2c0   :  { %1892 = vmatpush1.bf16.msra.mxu0 %v2803_v24  ;;  %v2857_v24 = vld [vmem:[#allocation4 + $0x270] ss:$8 sps:$4 sm:$0xff]  }
 0x2c1   :  { %1893 = vmatprep.subr.bf16.mxu0 %v2808_v27  ;;  %v2862_v27 = vld [vmem:[#allocation4 + $0x284] ss:$8 sps:$4 sm:$0xff]  }
 0x2c4   :  { %1894 = vmatpush1.bf16.msra.mxu0 %v2806_v29  ;;  %v2860_v29 = vld [vmem:[#allocation4 + $0x280] ss:$8 sps:$4 sm:$0xff]  }
 0x2c5   :  { %1895 = vmatprep.subr.bf16.mxu0 %v2811_v30  ;;  %v2865_v30 = vld [vmem:[#allocation4 + $0x294] ss:$8 sps:$4 sm:$0xff]  }
 0x2c8   :  { %1896 = vmatpush1.bf16.msra.mxu0 %v2809_v31  ;;  %v2863_v31 = vld [vmem:[#allocation4 + $0x290] ss:$8 sps:$4 sm:$0xff]  }
 0x2c9   :  { %1897 = vmatprep.subr.bf16.mxu0 %v2814_v32  ;;  %v2868_v32 = vld [vmem:[#allocation4 + $0x2a4] ss:$8 sps:$4 sm:$0xff]  }
 0x2cc   :  { %1898 = vmatpush1.bf16.msra.mxu0 %v2812_v33  ;;  %v2866_v33 = vld [vmem:[#allocation4 + $0x2a0] ss:$8 sps:$4 sm:$0xff]  }
 0x2cd   :  { %1899 = vmatprep.subr.bf16.mxu0 %v2817_v34  ;;  %v377_v34 = vsub.s32 4, %v3128_v25 }
 0x2cf   :  { %v378_v38 = vrot.slane %v3206_v53, %v377_v34 }
 0x2d0   :  { %1900 = vmatpush1.bf16.msra.mxu0 %v2815_v35  ;;  %v2871_v35 = vld [vmem:[#allocation4 + $0x2b4] ss:$8 sps:$4 sm:$0xff]  }
 0x2d1   :  { %1901 = vmatprep.subr.bf16.mxu0 %v2820_v36  ;;  %v381_v36 = vsub.s32 5, %v3128_v25 }
 0x2d4   :  { %1902 = vmatpush1.bf16.msra.mxu0 %v2818_v37  ;;  %v2869_v37 = vld [vmem:[#allocation4 + $0x2b0] ss:$8 sps:$4 sm:$0xff]  }
 0x2d5   :  { %1903 = vmatprep.subr.bf16.mxu0 %v2823_v41  ;;  %v2874_v41 = vld [vmem:[#allocation4 + $0x2c4] ss:$8 sps:$4 sm:$0xff]  }
 0x2d6   :  { %v1047_v50 = vpop.f32.mrb[8].mxu1 }
 0x2d7   :  { %v1049_v52 = vpop.f32.mrb[9].mxu1  ;;  %v1048_v58 = vadd.f32 %v1047_v50, %v370_v48  ;;  %v2872_v50 = vld [vmem:[#allocation4 + $0x2c0] ss:$8 sps:$4 sm:$0xff]  }
 0x2d8   :  { %v1051_v54 = vpop.f32.mrb[10].mxu1  ;;  %1904 = vmatpush1.bf16.msra.mxu0 %v2821_v47  ;;  %v1050_v39 = vadd.f32 %v1049_v52, %v374_v51  ;;  %v382_v47 = vrot.slane %v3206_v53, %v381_v36  ;;  %v2878_v53 = vld [vmem:[#allocation4 + $0x2e0] ss:$8 sps:$4 sm:$0xff]  }
 0x2d9   :  { %v1052_v59 = vadd.f32 %v1051_v54, %v370_v48  ;;  %v1053_v60 = vpop.f32.mrb[11].mxu1  ;;  %1905 = vmatprep.subr.bf16.mxu0 %v2826_v49 }
 0x2da   :  { %v1054_v62 = vadd.f32 %v1053_v60, %v374_v51 }
 0x2db   :  { %v1142_v3 = vpack.c.bf16 %v1052_v59, %v1048_v58 }
 0x2dc   :  { %v1143_v40 = vpack.c.bf16 %v1054_v62, %v1050_v39  ;;  %1906 = vmatpush1.bf16.msra.mxu0 %v2824_v55  ;;  %v2877_v55 = vld [vmem:[#allocation4 + $0x2d4] ss:$8 sps:$4 sm:$0xff]   ;;  %v2880_v39 = vld [vmem:[#allocation4 + $0x2e4] ss:$8 sps:$4 sm:$0xff]  }
 0x2dd   :  { %1907 = vmatprep.subr.bf16.mxu0 %v2829_v61  ;;  %v2875_v61 = vld [vmem:[#allocation4 + $0x2d0] ss:$8 sps:$4 sm:$0xff]   ;;  %v2883_v62 = vld [vmem:[#allocation4 + $0x2f4] ss:$8 sps:$4 sm:$0xff]  }
 0x2de   :  { %2940 = vtanh.bf16 %v1143_v40  ;;  %v2886_v40 = vld [vmem:[#allocation4 + $0x304] ss:$8 sps:$4 sm:$0xff]  }
 0x2df   :  { %2942 = vtanh.bf16 %v1142_v3  ;;  %v2881_v3 = vld [vmem:[#allocation4 + $0x2f0] ss:$8 sps:$4 sm:$0xff]  }
 0x2e0   :  { %1908 = vmatpush1.bf16.msra.mxu0 %v2827_v42  ;;  %v2884_v42 = vld [vmem:[#allocation4 + $0x300] ss:$8 sps:$4 sm:$0xff]  }
 0x2e1   :  { %1909 = vmatprep.subr.bf16.mxu0 %v2832_v45 }
 0x2e4   :  { %1910 = vmatpush1.bf16.msra.mxu0 %v2830_v63  ;;  %v2889_v63 = vld [vmem:[#allocation4 + $0x314] ss:$8 sps:$4 sm:$0xff]  }
 0x2e5   :  { %1911 = vmatprep.subr.bf16.mxu0 %v2835_v2 }
 0x2e8   :  { %1912 = vmatpush1.bf16.msra.mxu0 %v2833_v4  ;;  %v2887_v4 = vld [vmem:[#allocation4 + $0x310] ss:$8 sps:$4 sm:$0xff]  }
 0x2e9   :  { %v2941_v7 = vpop.eup %2940  ;;  %1924 = vmatprep.subr.bf16.mxu0 %v2838_v5  ;;  %v2892_v5 = vld [vmem:[#allocation4 + $0x324] ss:$8 sps:$4 sm:$0xff]  }
 0x2ea   :  { %v2943_v10 = vpop.eup %2942  ;;  %1913 = vmatprep.mubr.bf16.mxu0 %v2941_v7  ;;  %v2895_v7 = vld [vmem:[#allocation4 + $0x334] ss:$8 sps:$4 sm:$0xff]  }
 0x2eb   :  { %1914 = vmatmul.mubr.bf16.vlgmr.msra.gmra.mrb[4].mxu0 %v2943_v10  ;;  %v2898_v10 = vld [vmem:[#allocation4 + $0x344] ss:$8 sps:$4 sm:$0xff]  }
 0x2ec   :  { %1925 = vmatpush1.bf16.msra.mxu0 %v2836_v6  ;;  %v2890_v6 = vld [vmem:[#allocation4 + $0x320] ss:$8 sps:$4 sm:$0xff]  }
 0x2ed   :  { %1926 = vmatprep.subr.bf16.mxu0 %v2841_v8  ;;  %v2893_v8 = vld [vmem:[#allocation4 + $0x330] ss:$8 sps:$4 sm:$0xff]  }
 0x2f0   :  { %1927 = vmatpush1.bf16.msra.mxu0 %v2839_v13  ;;  %v2896_v13 = vld [vmem:[#allocation4 + $0x340] ss:$8 sps:$4 sm:$0xff]  }
 0x2f1   :  { %1928 = vmatprep.subr.bf16.mxu0 %v2844_v14  ;;  %v2901_v14 = vld [vmem:[#allocation4 + $0x354] ss:$8 sps:$4 sm:$0xff]  }
 0x2f4   :  { %1929 = vmatpush1.bf16.msra.mxu0 %v2842_v1  ;;  %v2899_v1 = vld [vmem:[#allocation4 + $0x350] ss:$8 sps:$4 sm:$0xff]  }
 0x2f5   :  { %1930 = vmatprep.subr.bf16.mxu0 %v2847_v15  ;;  %v2904_v15 = vld [vmem:[#allocation4 + $0x364] ss:$8 sps:$4 sm:$0xff]  }
 0x2f8   :  { %1931 = vmatpush1.bf16.msra.mxu0 %v2845_v16  ;;  %v2907_v16 = vld [vmem:[#allocation4 + $0x374] ss:$8 sps:$4 sm:$0xff]  }
 0x2f9   :  { %1932 = vmatprep.subr.bf16.mxu0 %v2850_v17  ;;  %v2905_v17 = vld [vmem:[#allocation4 + $0x370] ss:$8 sps:$4 sm:$0xff]  }
 0x2fc   :  { %1933 = vmatpush1.bf16.msra.mxu0 %v2848_v18 }
 0x2fd   :  { %1934 = vmatprep.subr.bf16.mxu0 %v2853_v19  ;;  %v1266_v19 = vld [vmem:[%s3332_s6] sm:$0x3] }
 0x300   :  { %1935 = vmatpush1.bf16.msra.mxu0 %v2851_v20  ;;  %v1271_v20 = vrot.slane %v1266_v19, %v3131_v26 }
 0x301   :  { %1936 = vmatprep.subr.bf16.mxu0 %v2856_v21  ;;  %v1275_v21 = vrot.slane %v1266_v19, %v3137_v28 }
 0x304   :  { %1937 = vmatpush1.bf16.msra.mxu0 %v2854_v22 }
 0x305   :  { %1938 = vmatprep.subr.bf16.mxu0 %v2859_v23 }
 0x308   :  { %1939 = vmatpush1.bf16.msra.mxu0 %v2857_v24 }
 0x309   :  { %1940 = vmatprep.subr.bf16.mxu0 %v2862_v27 }
 0x30c   :  { %1941 = vmatpush1.bf16.msra.mxu0 %v2860_v29 }
 0x30d   :  { %1942 = vmatprep.subr.bf16.mxu0 %v2865_v30 }
 0x310   :  { %1943 = vmatpush1.bf16.msra.mxu0 %v2863_v31 }
 0x311   :  { %1944 = vmatprep.subr.bf16.mxu0 %v2868_v32 }
 0x314   :  { %1945 = vmatpush1.bf16.msra.mxu0 %v2866_v33 }
 0x315   :  { %1946 = vmatprep.subr.bf16.mxu0 %v2871_v35 }
 0x316   :  { %v1090_v43 = vpop.f32.mrb[12].mxu1 }
 0x317   :  { %v1092_v48 = vpop.f32.mrb[13].mxu1  ;;  %v1091_v51 = vadd.f32 %v1090_v43, %v378_v38  ;;  %v2908_v43 = vld [vmem:[%s3333_s7 + $0x40] sm:$0xff]  }
 0x318   :  { %v1094_v49 = vpop.f32.mrb[14].mxu1  ;;  %1947 = vmatpush1.bf16.msra.mxu0 %v2869_v37  ;;  %v1093_v58 = vadd.f32 %v1092_v48, %v382_v47  ;;  %2529 = vmatprep.subr.bf16.mxu1 %v2908_v43  ;;  %v2910_v48 = vld [vmem:[%s3333_s7 + $0x48] sm:$0xff]  }
 0x319   :  { %v1095_v52 = vadd.f32 %v1094_v49, %v378_v38  ;;  %v1096_v54 = vpop.f32.mrb[15].mxu1  ;;  %1948 = vmatprep.subr.bf16.mxu0 %v2874_v41  ;;  %v2911_v49 = vld [vmem:[%s3333_s7 + $0x8] sm:$0xff]  }
 0x31a   :  { %v1097_v25 = vadd.f32 %v1096_v54, %v382_v47  ;;  %v2909_v47 = vld [vmem:[%s3333_s7] sm:$0xff]   ;;  %v2915_v54 = vld [vmem:[%s3333_s7 + $0x18] sm:$0xff]  }
 0x31b   :  { %v1144_v59 = vpack.c.bf16 %v1095_v52, %v1091_v51  ;;  %2530 = vmatpush3.bf16.msra.mxu1 %v2909_v47  ;;  %v2913_v51 = vld [vmem:[%s3333_s7 + $0x10] sm:$0xff]   ;;  %v2914_v52 = vld [vmem:[%s3333_s7 + $0x58] sm:$0xff]  }
 0x31c   :  { %v1145_v60 = vpack.c.bf16 %v1097_v25, %v1093_v58  ;;  %1949 = vmatpush1.bf16.msra.mxu0 %v2872_v50  ;;  %2531 = vmatprep.subr.bf16.mxu1 %v2910_v48  ;;  %v2912_v50 = vld [vmem:[%s3333_s7 + $0x50] sm:$0xff]   ;;  %v2917_v58 = vld [vmem:[%s3333_s7 + $0x20] sm:$0xff]   ;;  %v2918_v25 = vld [vmem:[%s3333_s7 + $0x68] sm:$0xff]  }
 0x31d   :  { %1950 = vmatprep.subr.bf16.mxu0 %v2877_v55  ;;  %v2916_v55 = vld [vmem:[%s3333_s7 + $0x60] sm:$0xff]  }
 0x31e   :  { %2944 = vtanh.bf16 %v1145_v60  ;;  %v2920_v60 = vld [vmem:[%s3333_s7 + $0x70] sm:$0xff]  }
 0x31f   :  { %2946 = vtanh.bf16 %v1144_v59  ;;  %2532 = vmatpush3.bf16.msra.mxu1 %v2911_v49  ;;  %v2919_v59 = vld [vmem:[%s3333_s7 + $0x28] sm:$0xff]  }
 0x320   :  { %1951 = vmatpush1.bf16.msra.mxu0 %v2875_v61  ;;  %2948 = vtanh.bf16 %v1146_v12  ;;  %2533 = vmatprep.subr.bf16.mxu1 %v2912_v50  ;;  %v2921_v61 = vld [vmem:[%s3333_s7 + $0x30] sm:$0xff]  }
 0x321   :  { %1952 = vmatprep.subr.bf16.mxu0 %v2880_v39  ;;  %v2922_v39 = vld [vmem:[%s3333_s7 + $0x78] sm:$0xff]  }
 0x323   :  { %2534 = vmatpush3.bf16.msra.mxu1 %v2913_v51 }
 0x324   :  { %1953 = vmatpush1.bf16.msra.mxu0 %v2878_v53  ;;  %2535 = vmatprep.subr.bf16.mxu1 %v2914_v52  ;;  %v2923_v53 = vld [vmem:[%s3333_s7 + $0x38] sm:$0xff]  }
 0x325   :  { %1954 = vmatprep.subr.bf16.mxu0 %v2883_v62 }
 0x327   :  { %2536 = vmatpush3.bf16.msra.mxu1 %v2915_v54 }
 0x328   :  { %1955 = vmatpush1.bf16.msra.mxu0 %v2881_v3  ;;  %2537 = vmatprep.subr.bf16.mxu1 %v2916_v55 }
 0x329   :  { %v2945_v45 = vpop.eup %2944  ;;  %1967 = vmatprep.subr.bf16.mxu0 %v2886_v40 }
 0x32a   :  { %v2947_v2 = vpop.eup %2946  ;;  %1956 = vmatprep.mubr.bf16.mxu0 %v2945_v45 }
 0x32b   :  { %1957 = vmatmul.mubr.bf16.vlgmr.msra.gmra.mrb[4].mxu0 %v2947_v2  ;;  %v2949_v18 = vpop.eup %2948  ;;  %2538 = vmatpush3.bf16.msra.mxu1 %v2917_v58 }
 0x32c   :  { %1968 = vmatpush1.bf16.msra.mxu0 %v2884_v42  ;;  %1999 = vmatprep.mubr.bf16.mxu0 %v3024_v0  ;;  %v2902_v0 = vld [vmem:[#allocation4 + $0x360] ss:$8 sps:$4 sm:$0xff]  }
 0x32d   :  { %1969 = vmatprep.subr.bf16.mxu0 %v2889_v63  ;;  %2539 = vmatprep.subr.bf16.mxu1 %v2918_v25 }
 0x32f   :  { %2540 = vmatpush3.bf16.msra.mxu1 %v2919_v59 }
 0x330   :  { %1970 = vmatpush1.bf16.msra.mxu0 %v2887_v4  ;;  %2541 = vmatprep.subr.bf16.mxu1 %v2920_v60 }
 0x331   :  { %1971 = vmatprep.subr.bf16.mxu0 %v2892_v5 }
 0x333   :  { %2542 = vmatpush3.bf16.msra.mxu1 %v2921_v61 }
 0x334   :  { %1972 = vmatpush1.bf16.msra.mxu0 %v2890_v6  ;;  %2543 = vmatprep.subr.bf16.mxu1 %v2922_v39 }
 0x335   :  { %1973 = vmatprep.subr.bf16.mxu0 %v2895_v7 }
 0x337   :  { %2544 = vmatpush3.bf16.msra.mxu1 %v2923_v53 }
 0x338   :  { %1974 = vmatpush1.bf16.msra.mxu0 %v2893_v8 }
 0x339   :  { %1975 = vmatprep.subr.bf16.mxu0 %v2898_v10 }
 0x33c   :  { %1976 = vmatpush1.bf16.msra.mxu0 %v2896_v13 }
 0x33d   :  { %1977 = vmatprep.subr.bf16.mxu0 %v2901_v14 }
 0x340   :  { %1978 = vmatpush1.bf16.msra.mxu0 %v2899_v1 }
 0x341   :  { %1979 = vmatprep.subr.bf16.mxu0 %v2904_v15 }
 0x344   :  { %1980 = vmatpush1.bf16.msra.mxu0 %v2902_v0 }
 0x345   :  { %1981 = vmatprep.subr.bf16.mxu0 %v2907_v16 }
 0x348   :  { %1982 = vmatpush1.bf16.msra.mxu0 %v2905_v17 }
 0x34b   :  { %2000 = vmatmul.mubr.bf16.vlgmr.msra.gmra.mrb[4].mxu0 %v2949_v18 }
 0x41e   :  { %v2001_v9 = vpop.f32.mrb[4].mxu0 }
 0x41f   :  { %v2551_v11 = vadd.f32 %v2001_v9, %v1271_v20  ;;  %v2003_v12 = vpop.f32.mrb[5].mxu0 }
 0x420   :  { %v2552_v22 = vadd.f32 %v2003_v12, %v1275_v21  ;;  %v2005_v23 = vpop.f32.mrb[6].mxu0 }
 0x421   :  { %2950 = vtanh.f32 %v2551_v11  ;;  %v2553_v24 = vadd.f32 %v2005_v23, %v1271_v20  ;;  %v2007_v27 = vpop.f32.mrb[7].mxu0 }
 0x422   :  { %2952 = vtanh.f32 %v2552_v22  ;;  %v2554_v29 = vadd.f32 %v2007_v27, %v1275_v21 }
 0x423   :  { %2954 = vtanh.f32 %v2553_v24 }
 0x424   :  { %2956 = vtanh.f32 %v2554_v29 }
 0x42b   :  { %v3237_v30 = vpop.eup %2950 }
 0x42c   :  { %v3239_v31 = vpop.eup %2952  ;;  %v2022_v28 = vmul.f32 %v3237_v30, %v3237_v30 }
 0x42d   :  { %v3241_v32 = vpop.eup %2954  ;;  %v2014_v26 = vadd.f32 %v3239_v31, %v3237_v30  ;;  %v2023_v33 = vmul.f32 %v3239_v31, %v3239_v31 }
 0x42e   :  { %v3249_v34 = vpop.eup %2956  ;;  %v2024_v36 = vmul.f32 %v3241_v32, %v3241_v32 }
 0x42f   :  { %2015 = vadd.xlane.f32.xlu0 %v2014_v26  ;;  %v2017_v35 = vadd.f32 %v3249_v34, %v3241_v32  ;;  %v2025_v37 = vmul.f32 %v3249_v34, %v3249_v34  ;;  %v2026_v38 = vadd.f32 %v2023_v33, %v2022_v28 }
 0x431   :  { %2018 = vadd.xlane.f32.xlu1 %v2017_v35  ;;  %v2029_v41 = vadd.f32 %v2025_v37, %v2024_v36 }
 0x433   :  { %2027 = vadd.xlane.f32.xlu0 %v2026_v38 }
 0x435   :  { %2030 = vadd.xlane.f32.xlu1 %v2029_v41 }
 0x4bc   :  { %v2016_v62 = vpop.xlane.xlu0 %2015 }
 0x4bd   :  { %v2020_v3 = vmul.f32 0.005, %v2016_v62 }
 0x4be   :  { %v2019_v40 = vpop.xlane.xlu1 %2018 }
 0x4bf   :  { %v2021_v42 = vmul.f32 0.005, %v2019_v40  ;;  %v2034_v63 = vmul.f32 %v2020_v3, %v2020_v3  ;;  %v2044_v0 = vsub.f32 %v3237_v30, %v2020_v3  ;;  %v2045_v16 = vsub.f32 %v3239_v31, %v2020_v3 }
 0x4c0   :  { %v2028_v45 = vpop.xlane.xlu0 %2027 }
 0x4c1   :  { %v2032_v2 = vmul.f32 0.005, %v2028_v45  ;;  %v2035_v6 = vmul.f32 %v2021_v42, %v2021_v42  ;;  %v2046_v20 = vsub.f32 %v3241_v32, %v2021_v42  ;;  %v2047_v21 = vsub.f32 %v3249_v34, %v2021_v42 }
 0x4c2   :  { %v2031_v4 = vpop.xlane.xlu1 %2030 }
 0x4c3   :  { %v2036_v5 = vsub.f32 %v2032_v2, %v2034_v63  ;;  %v2033_v7 = vmul.f32 0.005, %v2031_v4 }
 0x4c5   :  { %v2038_v8 = vmax.f32 %v2036_v5, 0.0  ;;  %v2037_v10 = vsub.f32 %v2033_v7, %v2035_v6 }
 0x4c7   :  { %v2040_v13 = vadd.f32 1e-05, %v2038_v8  ;;  %v2039_v14 = vmax.f32 %v2037_v10, 0.0 }
 0x4c9   :  { %2958 = vrsqrt.f32 %v2040_v13  ;;  %v2041_v1 = vadd.f32 1e-05, %v2039_v14 }
 0x4cb   :  { %2960 = vrsqrt.f32 %v2041_v1 }
 0x4d3   :  { %v2959_v15 = vpop.eup %2958 }
 0x4d4   :  { %v2049_v17 = vmul.f32 %v2959_v15, %v3165_v44  ;;  %v2048_v18 = vmul.f32 %v2959_v15, %v3168_v46 }
 0x4d5   :  { %v2961_v19 = vpop.eup %2960 }
 0x4d6   :  { %v2051_v9 = vmul.f32 %v2961_v19, %v3165_v44  ;;  %v2053_v11 = vmul.f32 %v2049_v17, %v2045_v16  ;;  %v2050_v12 = vmul.f32 %v2961_v19, %v3168_v46  ;;  %v2052_v22 = vmul.f32 %v2048_v18, %v2044_v0  ;;  %v2488_v44 = vld [vmem:[%s3334_s8] ss:$0 sm:$0xff] }
 0x4d8   :  { %v2055_v23 = vmul.f32 %v2051_v9, %v2047_v21  ;;  %v2054_v24 = vmul.f32 %v2050_v12, %v2046_v20  ;;  %v2057_v27 = vadd.f32 %v2053_v11, %v3180_v56  ;;  %v2056_v30 = vadd.f32 %v2052_v22, %v3183_v57 }
 0x4da   :  { %v2059_v29 = vadd.f32 %v2055_v23, %v3180_v56  ;;  %v2058_v31 = vadd.f32 %v2054_v24, %v3183_v57 }
 0x4dc   :  { %v2061_v26 = vpack.c.bf16 %v2059_v29, %v2057_v27  ;;  %v2060_v32 = vpack.c.bf16 %v2058_v31, %v2056_v30 }
 0x4de   :  { %2229 = vmatprep.mubr.bf16.mxu1 %v2061_v26 }
 0x4df   :  { %2230 = vmatmul.mubr.bf16.vlgmr.msra.gmra.mrb[16].mxu1 %v2060_v32 }
 0x5b2   :  { %v2545_v28 = vpop.f32.mrb[16].mxu1 }
 0x5b3   :  { %v2546_v46 = vpop.f32.mrb[17].mxu1 }
 0x5b4   :  { %v2547_v33 = vadd.f32 %v2546_v46, %v2545_v28  ;;  %v2548_v34 = vpop.f32.mrb[18].mxu1 }
 0x5b5   :  { %v2549_v35 = vpop.f32.mrb[19].mxu1 }
 0x5b6   :  { %v2232_v36 = vadd.f32 %v2547_v33, %v2488_v44  ;;  %v2550_v37 = vadd.f32 %v2549_v35, %v2548_v34 }
 0x5b8   :  { %v2505_v56 = vmul.f32 -1.442695, %v2232_v36  ;;  %v2235_v38 = vadd.f32 %v2550_v37, %v2488_v44 }
 0x5ba   :  { %2962 = vpow2.f32 %v2505_v56  ;;  %v2506_v41 = vmul.f32 -1.442695, %v2235_v38 }
 0x5bc   :  { %2964 = vpow2.f32 %v2506_v41 }
 0x5c4   :  { %v2963_v57 = vpop.eup %2962 }
 0x5c5   :  { %v2244_v43 = vadd.f32 1.0, %v2963_v57 }
 0x5c6   :  { %v2965_v47 = vpop.eup %2964 }
 0x5c7   :  { %2966 = vrcp.f32 %v2244_v43  ;;  %v2245_v48 = vadd.f32 1.0, %v2965_v47 }
 0x5c9   :  { %2968 = vrcp.f32 %v2245_v48 }
 0x5d1   :  { %v2967_v49 = vpop.eup %2966 }
 0x5d2   :  { %2251 = vst.msk [vmem:[%s3337_s11] sm:$0xff] %vm2250_vm1, %v2967_v49 }
 0x5d3   :  { %v2969_v50 = vpop.eup %2968 }
 0x5d4   :  { %2252 = vst.msk [vmem:[%s3337_s11 + $0x8] sm:$0xff] %vm2250_vm1, %v2969_v50 }
 0x5d5   :  { %2257 = vsyncpa [#allocation3], 1 }
 0x5d6   :  { %2258 = vsyncpa [#allocation5], 1 }

</bundles_post_ra>
